<compile_context>
chip_gen: v7x
topology: tpu7x:2x2x1
jax: 0.10.0
libtpu: 0.0.40
codegen_flags: <defaults>
</compile_context>

<pallas_src>
import math

import jax
import jax.numpy as jnp
from jax import lax
from jax.experimental import pallas as pl
from jax.experimental.pallas import tpu as pltpu

# ----------------------------------------------------------------------------
# Small synthetic config (stand-in for 'dbmdz/bert-base-turkish-cased':
# real model is H=768, 12 layers, 12 heads; same structure at TPU-friendly
# small sizes).
# ----------------------------------------------------------------------------
VOCAB = 100
MAX_POS = 32
B = 2            # batch
S = 8            # sequence length
H = 128          # hidden size
NH = 2           # attention heads
HD = H // NH     # head dim
INTER = 256      # FFN intermediate size
NLAYERS = 2
LN_EPS = 1e-12

OUT_PAD = 128    # lane-dense padded width of the fused (hate|target) head output
NUM_HATE = 1
NUM_TARGET = 3


# ----------------------------------------------------------------------------
# In-kernel helpers
# ----------------------------------------------------------------------------
def _layer_norm(y, g, b):
    mu = jnp.mean(y, axis=-1, keepdims=True)
    var = jnp.mean(jnp.square(y - mu), axis=-1, keepdims=True)
    return (y - mu) * jax.lax.rsqrt(var + LN_EPS) * g + b


def _gelu(x):
    # TODO(synk): HF BERT uses exact erf-GELU; tanh approximation used for Mosaic-safe lowering.
    c = math.sqrt(2.0 / math.pi)
    return 0.5 * x * (1.0 + jnp.tanh(c * (x + 0.044715 * x * x * x)))


# ----------------------------------------------------------------------------
# Fully fused kernel: all encoder layers + pooler + classification heads.
# grid = (batch,); the layer loop is an in-kernel unrolled fori_loop with all
# layer weights VMEM-resident (full leading-NLAYERS blocks).
# ----------------------------------------------------------------------------
def fused_bert_kernel(x_ref, neg_ref,
                      wqkv_ref, bqkv_ref, wo_ref, bo_ref, g1_ref, be1_ref,
                      w1_ref, b1_ref, w2_ref, b2_ref, g2_ref, be2_ref,
                      wp_ref, bp_ref, whd_ref, bhd_ref,
                      out_ref):
    neg = neg_ref[0]                                    # [1, S] additive key mask

    def layer(l, x):
        xb = x.astype(jnp.bfloat16)

        # ---- fused, lane-dense QKV projection (one N=384, K=128 MXU push) ----
        qkv = jnp.dot(xb, wqkv_ref[l],
                      preferred_element_type=jnp.float32) + bqkv_ref[l]   # [S, 3H]
        # split (proj, head) with a single small relayout: [S,3H]->[3NH,S,HD]
        qkvh = qkv.reshape(S, 3 * NH, HD).transpose(1, 0, 2)
        qh = qkvh[:NH]                                   # [NH, S, HD] (scale folded in)
        kh = qkvh[NH:2 * NH]
        vh = qkvh[2 * NH:]

        # ---- heads-batched attention -----------------------------------------
        s = jnp.einsum('hqd,hkd->hqk', qh, kh,
                       preferred_element_type=jnp.float32)                # [NH,S,S]
        s = s + neg
        s = s - jnp.max(s, axis=-1, keepdims=True)
        p = jnp.exp(s)
        p = p * pl.reciprocal(jnp.sum(p, axis=-1, keepdims=True), approx=True)
        ctx = jnp.einsum('hqk,hkd->hqd', p, vh,
                         preferred_element_type=jnp.float32)              # [NH,S,HD]

        # ---- output projection: one full-K [S,128]@[128,128] dot --------------
        ctx2 = ctx.transpose(1, 0, 2).reshape(S, H)                       # [S, H]
        attn = jnp.dot(ctx2.astype(jnp.bfloat16), wo_ref[l],
                       preferred_element_type=jnp.float32) + bo_ref[l]
        x1 = _layer_norm(x + attn, g1_ref[l], be1_ref[l])

        # ---- FFN ---------------------------------------------------------------
        h1 = _gelu(jnp.dot(x1.astype(jnp.bfloat16), w1_ref[l],
                           preferred_element_type=jnp.float32) + b1_ref[l])
        h2 = jnp.dot(h1.astype(jnp.bfloat16), w2_ref[l],
                     preferred_element_type=jnp.float32) + b2_ref[l]
        return _layer_norm(x1 + h2, g2_ref[l], be2_ref[l])

    x = lax.fori_loop(0, NLAYERS, layer, x_ref[0], unroll=True)           # [S, H]

    # ---- pooler + fused (hate | target) heads epilogue -----------------------
    cls = x[0:1, :]                                                        # [1, H]
    pooled = jnp.tanh(jnp.dot(cls.astype(jnp.bfloat16), wp_ref[...],
                              preferred_element_type=jnp.float32) + bp_ref[...])
    logits = jnp.dot(pooled.astype(jnp.bfloat16), whd_ref[...],
                     preferred_element_type=jnp.float32) + bhd_ref[...]    # [1, OUT_PAD]
    out_ref[...] = logits.reshape(1, 1, OUT_PAD).astype(out_ref.dtype)


def fused_bert_pallas(x, neg, w):
    def bmap3(b): return (b, 0, 0)
    def cmap3(b): return (0, 0, 0)
    def cmap2(b): return (0, 0)

    # TODO(synk): at real BERT size (H=768, INTER=3072, 12 layers) the all-resident
    # weight block would not fit v7x VMEM; tile w1/w2 along INTER with an extra grid
    # axis and set vmem_limit_bytes when scaling up.
    in_specs = [
        pl.BlockSpec((1, S, H), bmap3),                     # x (embeddings)
        pl.BlockSpec((1, 1, S), bmap3),                     # additive attention mask
        pl.BlockSpec((NLAYERS, H, 3 * H), cmap3),           # wqkv packed [.,128,384] bf16
        pl.BlockSpec((NLAYERS, 1, 3 * H), cmap3),           # bqkv [.,1,384]
        pl.BlockSpec((NLAYERS, H, H), cmap3),               # wo bf16
        pl.BlockSpec((NLAYERS, 1, H), cmap3),               # bo
        pl.BlockSpec((NLAYERS, 1, H), cmap3),               # ln1 gamma
        pl.BlockSpec((NLAYERS, 1, H), cmap3),               # ln1 beta
        pl.BlockSpec((NLAYERS, H, INTER), cmap3),           # w1 bf16
        pl.BlockSpec((NLAYERS, 1, INTER), cmap3),           # b1
        pl.BlockSpec((NLAYERS, INTER, H), cmap3),           # w2 bf16
        pl.BlockSpec((NLAYERS, 1, H), cmap3),               # b2
        pl.BlockSpec((NLAYERS, 1, H), cmap3),               # ln2 gamma
        pl.BlockSpec((NLAYERS, 1, H), cmap3),               # ln2 beta
        pl.BlockSpec((H, H), cmap2),                        # pooler W bf16
        pl.BlockSpec((1, H), cmap2),                        # pooler b
        pl.BlockSpec((H, OUT_PAD), cmap2),                  # fused heads W (lane-padded) bf16
        pl.BlockSpec((1, OUT_PAD), cmap2),                  # fused heads b
    ]

    return pl.pallas_call(
        fused_bert_kernel,
        out_shape=jax.ShapeDtypeStruct((B, 1, OUT_PAD), jnp.float32),
        grid=(B,),
        in_specs=in_specs,
        out_specs=pl.BlockSpec((1, 1, OUT_PAD), bmap3),
        compiler_params=pltpu.CompilerParams(
            dimension_semantics=("parallel",)),
    )(x, neg,
      w['wqkv'], w['bqkv'], w['wo'], w['bo'], w['g1'], w['be1'],
      w['w1'], w['b1'], w['w2'], w['b2'], w['g2'], w['be2'],
      w['wp'], w['bp'], w['whd'], w['bhd'])


# ----------------------------------------------------------------------------
# Parameter init (deterministic, synthetic)
# ----------------------------------------------------------------------------
def init_params(seed=0):
    key = jax.random.PRNGKey(seed)

    def nxt():
        nonlocal key
        key, sub = jax.random.split(key)
        return sub

    w = lambda shape: 0.02 * jax.random.normal(nxt(), shape, jnp.float32)
    zeros2 = lambda d: jnp.zeros((1, d), jnp.float32)
    ones2 = lambda d: jnp.ones((1, d), jnp.float32)

    params = {
        'word_emb': w((VOCAB, H)),
        'pos_emb': w((MAX_POS, H)),
        'type_emb': w((2, H)),
        'emb_g': jnp.ones((H,), jnp.float32),
        'emb_b': jnp.zeros((H,), jnp.float32),
        'layers': [],
        # pooler
        'wp': w((H, H)), 'bp': zeros2(H),
        # hate_head: Linear(768 -> 1)  (here H -> 1)
        'wh': w((H, NUM_HATE)), 'bh': jnp.zeros((1, NUM_HATE), jnp.float32),
        # target_head: Linear(768 -> 3)  (here H -> 3)
        'wt': w((H, NUM_TARGET)), 'bt': jnp.zeros((1, NUM_TARGET), jnp.float32),
    }
    for _ in range(NLAYERS):
        params['layers'].append({
            'wq': w((H, H)), 'bq': zeros2(H),
            'wk': w((H, H)), 'bk': zeros2(H),
            'wv': w((H, H)), 'bv': zeros2(H),
            'wo': w((H, H)), 'bo': zeros2(H),
            'g1': ones2(H), 'be1': zeros2(H),
            'w1': w((H, INTER)), 'b1': zeros2(INTER),
            'w2': w((INTER, H)), 'b2': zeros2(H),
            'g2': ones2(H), 'be2': zeros2(H),
        })
    return params


def prepare_weights(params):
    """One-time (cached) weight prep: stack per-layer weights along a leading
    layer axis, pack QKV lane-dense as [L, H, 3H], fold the 1/sqrt(HD) scale
    into Wq/bq, fuse + lane-pad the classification heads, and cast matmul
    weights to bf16.  Done once at setup, never in the forward path."""
    scale = 1.0 / math.sqrt(HD)

    wqkv, bqkv = [], []
    rest_names = ('wo', 'bo', 'g1', 'be1', 'w1', 'b1', 'w2', 'b2', 'g2', 'be2')
    rest = {k: [] for k in rest_names}
    for lp in params['layers']:
        # column layout: [ q(H) | k(H) | v(H) ], each H factored (NH, HD) head-major
        wqkv.append(jnp.concatenate([lp['wq'] * scale, lp['wk'], lp['wv']], axis=1))
        bqkv.append(jnp.concatenate([lp['bq'] * scale, lp['bk'], lp['bv']], axis=1))
        for n in rest_names:
            rest[n].append(lp[n])

    stacked = {
        'wqkv': jnp.stack(wqkv).astype(jnp.bfloat16),     # [L, H, 3H]
        'bqkv': jnp.stack(bqkv),                          # [L, 1, 3H] f32
        'wo': jnp.stack(rest['wo']).astype(jnp.bfloat16),
        'w1': jnp.stack(rest['w1']).astype(jnp.bfloat16),
        'w2': jnp.stack(rest['w2']).astype(jnp.bfloat16),
    }
    for n in ('bo', 'g1', 'be1', 'b1', 'b2', 'g2', 'be2'):
        stacked[n] = jnp.stack(rest[n])

    # fused + lane-padded heads: column 0 = hate logit, columns 1:4 = target logits
    whd = jnp.zeros((H, OUT_PAD), jnp.float32)
    whd = whd.at[:, 0:NUM_HATE].set(params['wh'])
    whd = whd.at[:, NUM_HATE:NUM_HATE + NUM_TARGET].set(params['wt'])
    bhd = jnp.zeros((1, OUT_PAD), jnp.float32)
    bhd = bhd.at[:, 0:NUM_HATE].set(params['bh'])
    bhd = bhd.at[:, NUM_HATE:NUM_HATE + NUM_TARGET].set(params['bt'])

    stacked.update(
        wp=params['wp'].astype(jnp.bfloat16), bp=params['bp'],
        whd=whd.astype(jnp.bfloat16), bhd=bhd,
        word_emb=params['word_emb'], pos_emb=params['pos_emb'],
        type_emb=params['type_emb'], emb_g=params['emb_g'], emb_b=params['emb_b'],
    )
    return stacked


# ----------------------------------------------------------------------------
# Full forward (jitted; takes pre-prepped weights)
# ----------------------------------------------------------------------------
@jax.jit
def turkish_hate_bert_forward(w, input_ids, attention_mask):
    """Returns (hate_logits [B,1], target_logits [B,3])."""
    Bb, Ss = input_ids.shape
    # --- glue: embedding lookup + embedding LayerNorm (plain JAX, inside jit) ---
    # TODO(synk): token_type_ids hard-coded to segment 0 (matches module usage).
    emb = (w['word_emb'][input_ids]
           + w['pos_emb'][:Ss][None, :, :]
           + w['type_emb'][0][None, None, :])
    mu = jnp.mean(emb, axis=-1, keepdims=True)
    var = jnp.mean(jnp.square(emb - mu), axis=-1, keepdims=True)
    x = ((emb - mu) * jax.lax.rsqrt(var + LN_EPS)
         * w['emb_g'] + w['emb_b']).astype(jnp.float32)

    # additive attention mask, precomputed once for all layers
    neg = ((1.0 - attention_mask.astype(jnp.float32)) * (-1e9)).reshape(Bb, 1, Ss)

    # --- hot path: encoder layers + pooler + heads, one fused Pallas kernel ---
    out = fused_bert_pallas(x, neg, w)[:, 0, :]          # [B, OUT_PAD]
    hate_logits = out[:, 0:NUM_HATE]
    target_logits = out[:, NUM_HATE:NUM_HATE + NUM_TARGET]
    return hate_logits, target_logits


if __name__ == "__main__":
    params = init_params(0)
    # weight prep done ONCE, outside the per-call path
    prepped = jax.block_until_ready(prepare_weights(params))

    key = jax.random.PRNGKey(0)
    kid, _ = jax.random.split(key)
    input_ids = jax.random.randint(kid, (B, S), 0, VOCAB, dtype=jnp.int32)
    attention_mask = jnp.ones((B, S), jnp.float32).at[1, 6:].set(0.0)  # pad 2 tokens

    hate_logits, target_logits = turkish_hate_bert_forward(
        prepped, input_ids, attention_mask)
    jax.block_until_ready((hate_logits, target_logits))

    assert hate_logits.shape == (B, NUM_HATE)
    assert target_logits.shape == (B, NUM_TARGET)
    assert bool(jnp.all(jnp.isfinite(hate_logits)))
    assert bool(jnp.all(jnp.isfinite(target_logits)))
    print("KERNEL_OK")
</pallas_src>

<mosaic_0001>
module attributes {stable_mosaic.version = 11 : i64} {
  func.func @fused_bert_kernel(%arg0: i32, %arg1: memref<1x8x128xf32, #tpu.memory_space<vmem>>, %arg2: memref<1x1x8xf32, #tpu.memory_space<vmem>>, %arg3: memref<2x128x384xbf16, #tpu.memory_space<vmem>>, %arg4: memref<2x1x384xf32, #tpu.memory_space<vmem>>, %arg5: memref<2x128x128xbf16, #tpu.memory_space<vmem>>, %arg6: memref<2x1x128xf32, #tpu.memory_space<vmem>>, %arg7: memref<2x1x128xf32, #tpu.memory_space<vmem>>, %arg8: memref<2x1x128xf32, #tpu.memory_space<vmem>>, %arg9: memref<2x128x256xbf16, #tpu.memory_space<vmem>>, %arg10: memref<2x1x256xf32, #tpu.memory_space<vmem>>, %arg11: memref<2x256x128xbf16, #tpu.memory_space<vmem>>, %arg12: memref<2x1x128xf32, #tpu.memory_space<vmem>>, %arg13: memref<2x1x128xf32, #tpu.memory_space<vmem>>, %arg14: memref<2x1x128xf32, #tpu.memory_space<vmem>>, %arg15: memref<128x128xbf16, #tpu.memory_space<vmem>>, %arg16: memref<1x128xf32, #tpu.memory_space<vmem>>, %arg17: memref<128x128xbf16, #tpu.memory_space<vmem>>, %arg18: memref<1x128xf32, #tpu.memory_space<vmem>>, %arg19: memref<1x1x128xf32, #tpu.memory_space<vmem>>) attributes {dimension_semantics = [#tpu.dimension_semantics<parallel>], iteration_bounds = array<i64: 2>, scalar_prefetch = 0 : i64, scratch_operands = 0 : i64, tpu.core_type = #tpu.core_type<tc>, window_params = [{transform_indices = @transform_0, window_bounds = array<i64: 1, 8, 128>}, {transform_indices = @transform_1, window_bounds = array<i64: 1, 1, 8>}, {pipeline_mode = #tpu.pipeline_mode<synchronous>, transform_indices = @transform_2, window_bounds = array<i64: 2, 128, 384>}, {pipeline_mode = #tpu.pipeline_mode<synchronous>, transform_indices = @transform_3, window_bounds = array<i64: 2, 1, 384>}, {pipeline_mode = #tpu.pipeline_mode<synchronous>, transform_indices = @transform_4, window_bounds = array<i64: 2, 128, 128>}, {pipeline_mode = #tpu.pipeline_mode<synchronous>, transform_indices = @transform_5, window_bounds = array<i64: 2, 1, 128>}, {pipeline_mode = #tpu.pipeline_mode<synchronous>, transform_indices = @transform_6, window_bounds = array<i64: 2, 1, 128>}, {pipeline_mode = #tpu.pipeline_mode<synchronous>, transform_indices = @transform_7, window_bounds = array<i64: 2, 1, 128>}, {pipeline_mode = #tpu.pipeline_mode<synchronous>, transform_indices = @transform_8, window_bounds = array<i64: 2, 128, 256>}, {pipeline_mode = #tpu.pipeline_mode<synchronous>, transform_indices = @transform_9, window_bounds = array<i64: 2, 1, 256>}, {pipeline_mode = #tpu.pipeline_mode<synchronous>, transform_indices = @transform_10, window_bounds = array<i64: 2, 256, 128>}, {pipeline_mode = #tpu.pipeline_mode<synchronous>, transform_indices = @transform_11, window_bounds = array<i64: 2, 1, 128>}, {pipeline_mode = #tpu.pipeline_mode<synchronous>, transform_indices = @transform_12, window_bounds = array<i64: 2, 1, 128>}, {pipeline_mode = #tpu.pipeline_mode<synchronous>, transform_indices = @transform_13, window_bounds = array<i64: 2, 1, 128>}, {pipeline_mode = #tpu.pipeline_mode<synchronous>, transform_indices = @transform_14, window_bounds = array<i64: 128, 128>}, {pipeline_mode = #tpu.pipeline_mode<synchronous>, transform_indices = @transform_15, window_bounds = array<i64: 1, 128>}, {pipeline_mode = #tpu.pipeline_mode<synchronous>, transform_indices = @transform_16, window_bounds = array<i64: 128, 128>}, {pipeline_mode = #tpu.pipeline_mode<synchronous>, transform_indices = @transform_17, window_bounds = array<i64: 1, 128>}, {transform_indices = @transform_18, window_bounds = array<i64: 1, 1, 128>}]} {
    %c0 = arith.constant 0 : index
    %c0_0 = arith.constant 0 : index
    %c0_1 = arith.constant 0 : index
    %0 = vector.load %arg2[%c0, %c0_0, %c0_1] : memref<1x1x8xf32, #tpu.memory_space<vmem>>, vector<1x1x8xf32>
    %1 = vector.shape_cast %0 : vector<1x1x8xf32> to vector<1x8xf32>
    %c0_2 = arith.constant 0 : index
    %c0_3 = arith.constant 0 : index
    %c0_4 = arith.constant 0 : index
    %2 = vector.load %arg1[%c0_2, %c0_3, %c0_4] : memref<1x8x128xf32, #tpu.memory_space<vmem>>, vector<1x8x128xf32>
    %3 = vector.shape_cast %2 : vector<1x8x128xf32> to vector<8x128xf32>
    %c0_i32 = arith.constant 0 : i32
    %4 = arith.truncf %3 : vector<8x128xf32> to vector<8x128xbf16>
    %5 = arith.index_cast %c0_i32 : i32 to index
    %c0_5 = arith.constant 0 : index
    %c0_6 = arith.constant 0 : index
    %6 = vector.load %arg3[%5, %c0_5, %c0_6] : memref<2x128x384xbf16, #tpu.memory_space<vmem>>, vector<1x128x384xbf16>
    %7 = vector.shape_cast %6 : vector<1x128x384xbf16> to vector<128x384xbf16>
    %cst = arith.constant dense<0.000000e+00> : vector<8x384xf32>
    %8 = tpu.matmul %4, %7, %cst {dimension_numbers = #tpu.dot_dimension_numbers<[1], [0], [0], [1], [0, 0, 1, 1], [], []>} : vector<8x128xbf16>, vector<128x384xbf16>, vector<8x384xf32> -> vector<8x384xf32>
    %9 = arith.index_cast %c0_i32 : i32 to index
    %c0_7 = arith.constant 0 : index
    %c0_8 = arith.constant 0 : index
    %10 = vector.load %arg4[%9, %c0_7, %c0_8] : memref<2x1x384xf32, #tpu.memory_space<vmem>>, vector<1x1x384xf32>
    %11 = vector.shape_cast %10 : vector<1x1x384xf32> to vector<1x384xf32>
    %12 = vector.broadcast %11 : vector<1x384xf32> to vector<8x384xf32>
    %13 = arith.addf %8, %12 : vector<8x384xf32>
    %14 = vector.shape_cast %13 : vector<8x384xf32> to vector<8x6x64xf32>
    %15 = tpu.transpose %14, [1, 0, 2] : vector<8x6x64xf32> -> vector<6x8x64xf32>
    %16 = vector.extract_strided_slice %15 {offsets = [0, 0, 0], sizes = [2, 8, 64], strides = [1, 1, 1]} : vector<6x8x64xf32> to vector<2x8x64xf32>
    %17 = vector.extract_strided_slice %15 {offsets = [2, 0, 0], sizes = [2, 8, 64], strides = [1, 1, 1]} : vector<6x8x64xf32> to vector<2x8x64xf32>
    %18 = vector.extract_strided_slice %15 {offsets = [4, 0, 0], sizes = [2, 8, 64], strides = [1, 1, 1]} : vector<6x8x64xf32> to vector<2x8x64xf32>
    "tpu.trace_start"() <{level = 10 : i32, message = "hqd,hkd->hqk"}> : () -> ()
    %cst_9 = arith.constant dense<0.000000e+00> : vector<2x8x8xf32>
    %19 = tpu.matmul %16, %17, %cst_9 {dimension_numbers = #tpu.dot_dimension_numbers<[2], [2], [1], [1], [0, 0, 0, 1, 1, 1], [0], [0]>} : vector<2x8x64xf32>, vector<2x8x64xf32>, vector<2x8x8xf32> -> vector<2x8x8xf32>
    "tpu.trace_stop"() : () -> ()
    %20 = vector.shape_cast %1 : vector<1x8xf32> to vector<1x1x8xf32>
    %21 = vector.broadcast %20 : vector<1x1x8xf32> to vector<2x8x8xf32>
    %22 = arith.addf %19, %21 : vector<2x8x8xf32>
    %cst_10 = arith.constant dense<0xFF800000> : vector<2x8xf32>
    %23 = vector.multi_reduction <maximumf>, %22, %cst_10 [2] : vector<2x8x8xf32> to vector<2x8xf32>
    %24 = vector.shape_cast %23 : vector<2x8xf32> to vector<2x8x1xf32>
    %25 = vector.broadcast %24 : vector<2x8x1xf32> to vector<2x8x8xf32>
    %26 = arith.subf %22, %25 : vector<2x8x8xf32>
    %27 = math.exp %26 : vector<2x8x8xf32>
    %cst_11 = arith.constant dense<0.000000e+00> : vector<2x8xf32>
    %28 = vector.multi_reduction <add>, %27, %cst_11 [2] : vector<2x8x8xf32> to vector<2x8xf32>
    %29 = vector.shape_cast %28 : vector<2x8xf32> to vector<2x8x1xf32>
    %30 = tpu.reciprocal %29 {approx = true} : vector<2x8x1xf32> -> vector<2x8x1xf32>
    %31 = vector.broadcast %30 : vector<2x8x1xf32> to vector<2x8x8xf32>
    %32 = arith.mulf %27, %31 : vector<2x8x8xf32>
    "tpu.trace_start"() <{level = 10 : i32, message = "hqk,hkd->hqd"}> : () -> ()
    %cst_12 = arith.constant dense<0.000000e+00> : vector<2x8x64xf32>
    %33 = tpu.matmul %32, %18, %cst_12 {dimension_numbers = #tpu.dot_dimension_numbers<[2], [1], [1], [2], [0, 0, 0, 1, 1, 2], [0], [0]>} : vector<2x8x8xf32>, vector<2x8x64xf32>, vector<2x8x64xf32> -> vector<2x8x64xf32>
    "tpu.trace_stop"() : () -> ()
    %34 = tpu.transpose %33, [1, 0, 2] : vector<2x8x64xf32> -> vector<8x2x64xf32>
    %35 = vector.shape_cast %34 : vector<8x2x64xf32> to vector<8x128xf32>
    %36 = arith.truncf %35 : vector<8x128xf32> to vector<8x128xbf16>
    %37 = arith.index_cast %c0_i32 : i32 to index
    %c0_13 = arith.constant 0 : index
    %c0_14 = arith.constant 0 : index
    %38 = vector.load %arg5[%37, %c0_13, %c0_14] : memref<2x128x128xbf16, #tpu.memory_space<vmem>>, vector<1x128x128xbf16>
    %39 = vector.shape_cast %38 : vector<1x128x128xbf16> to vector<128x128xbf16>
    %cst_15 = arith.constant dense<0.000000e+00> : vector<8x128xf32>
    %40 = tpu.matmul %36, %39, %cst_15 {dimension_numbers = #tpu.dot_dimension_numbers<[1], [0], [0], [1], [0, 0, 1, 1], [], []>} : vector<8x128xbf16>, vector<128x128xbf16>, vector<8x128xf32> -> vector<8x128xf32>
    %41 = arith.index_cast %c0_i32 : i32 to index
    %c0_16 = arith.constant 0 : index
    %c0_17 = arith.constant 0 : index
    %42 = vector.load %arg6[%41, %c0_16, %c0_17] : memref<2x1x128xf32, #tpu.memory_space<vmem>>, vector<1x1x128xf32>
    %43 = vector.shape_cast %42 : vector<1x1x128xf32> to vector<1x128xf32>
    %44 = vector.broadcast %43 : vector<1x128xf32> to vector<8x128xf32>
    %45 = arith.addf %40, %44 : vector<8x128xf32>
    %46 = arith.addf %3, %45 : vector<8x128xf32>
    %47 = arith.index_cast %c0_i32 : i32 to index
    %c0_18 = arith.constant 0 : index
    %c0_19 = arith.constant 0 : index
    %48 = vector.load %arg7[%47, %c0_18, %c0_19] : memref<2x1x128xf32, #tpu.memory_space<vmem>>, vector<1x1x128xf32>
    %49 = vector.shape_cast %48 : vector<1x1x128xf32> to vector<1x128xf32>
    %50 = arith.index_cast %c0_i32 : i32 to index
    %c0_20 = arith.constant 0 : index
    %c0_21 = arith.constant 0 : index
    %51 = vector.load %arg8[%50, %c0_20, %c0_21] : memref<2x1x128xf32, #tpu.memory_space<vmem>>, vector<1x1x128xf32>
    %52 = vector.shape_cast %51 : vector<1x1x128xf32> to vector<1x128xf32>
    %cst_22 = arith.constant dense<0.000000e+00> : vector<8xf32>
    %53 = vector.multi_reduction <add>, %46, %cst_22 [1] : vector<8x128xf32> to vector<8xf32>
    %54 = vector.shape_cast %53 : vector<8xf32> to vector<8x1xf32>
    %cst_23 = arith.constant 1.280000e+02 : f32
    %55 = vector.broadcast %cst_23 : f32 to vector<8x1xf32>
    %56 = arith.divf %54, %55 : vector<8x1xf32>
    %57 = vector.broadcast %56 : vector<8x1xf32> to vector<8x128xf32>
    %58 = arith.subf %46, %57 : vector<8x128xf32>
    %59 = arith.mulf %58, %58 : vector<8x128xf32>
    %cst_24 = arith.constant dense<0.000000e+00> : vector<8xf32>
    %60 = vector.multi_reduction <add>, %59, %cst_24 [1] : vector<8x128xf32> to vector<8xf32>
    %61 = vector.shape_cast %60 : vector<8xf32> to vector<8x1xf32>
    %cst_25 = arith.constant 1.280000e+02 : f32
    %62 = vector.broadcast %cst_25 : f32 to vector<8x1xf32>
    %63 = arith.divf %61, %62 : vector<8x1xf32>
    %64 = vector.broadcast %56 : vector<8x1xf32> to vector<8x128xf32>
    %65 = arith.subf %46, %64 : vector<8x128xf32>
    %cst_26 = arith.constant 9.99999996E-13 : f32
    %66 = vector.broadcast %cst_26 : f32 to vector<8x1xf32>
    %67 = arith.addf %63, %66 : vector<8x1xf32>
    %68 = math.rsqrt %67 : vector<8x1xf32>
    %69 = vector.broadcast %68 : vector<8x1xf32> to vector<8x128xf32>
    %70 = arith.mulf %65, %69 : vector<8x128xf32>
    %71 = vector.broadcast %49 : vector<1x128xf32> to vector<8x128xf32>
    %72 = arith.mulf %70, %71 : vector<8x128xf32>
    %73 = vector.broadcast %52 : vector<1x128xf32> to vector<8x128xf32>
    %74 = arith.addf %72, %73 : vector<8x128xf32>
    %75 = arith.truncf %74 : vector<8x128xf32> to vector<8x128xbf16>
    %76 = arith.index_cast %c0_i32 : i32 to index
    %c0_27 = arith.constant 0 : index
    %c0_28 = arith.constant 0 : index
    %77 = vector.load %arg9[%76, %c0_27, %c0_28] : memref<2x128x256xbf16, #tpu.memory_space<vmem>>, vector<1x128x256xbf16>
    %78 = vector.shape_cast %77 : vector<1x128x256xbf16> to vector<128x256xbf16>
    %cst_29 = arith.constant dense<0.000000e+00> : vector<8x256xf32>
    %79 = tpu.matmul %75, %78, %cst_29 {dimension_numbers = #tpu.dot_dimension_numbers<[1], [0], [0], [1], [0, 0, 1, 1], [], []>} : vector<8x128xbf16>, vector<128x256xbf16>, vector<8x256xf32> -> vector<8x256xf32>
    %80 = arith.index_cast %c0_i32 : i32 to index
    %c0_30 = arith.constant 0 : index
    %c0_31 = arith.constant 0 : index
    %81 = vector.load %arg10[%80, %c0_30, %c0_31] : memref<2x1x256xf32, #tpu.memory_space<vmem>>, vector<1x1x256xf32>
    %82 = vector.shape_cast %81 : vector<1x1x256xf32> to vector<1x256xf32>
    %83 = vector.broadcast %82 : vector<1x256xf32> to vector<8x256xf32>
    %84 = arith.addf %79, %83 : vector<8x256xf32>
    %cst_32 = arith.constant 5.000000e-01 : f32
    %85 = vector.broadcast %cst_32 : f32 to vector<8x256xf32>
    %86 = arith.mulf %85, %84 : vector<8x256xf32>
    %cst_33 = arith.constant 4.471500e-02 : f32
    %87 = vector.broadcast %cst_33 : f32 to vector<8x256xf32>
    %88 = arith.mulf %87, %84 : vector<8x256xf32>
    %89 = arith.mulf %88, %84 : vector<8x256xf32>
    %90 = arith.mulf %89, %84 : vector<8x256xf32>
    %91 = arith.addf %84, %90 : vector<8x256xf32>
    %cst_34 = arith.constant 0.797884583 : f32
    %92 = vector.broadcast %cst_34 : f32 to vector<8x256xf32>
    %93 = arith.mulf %92, %91 : vector<8x256xf32>
    %94 = math.tanh %93 : vector<8x256xf32>
    %cst_35 = arith.constant 1.000000e+00 : f32
    %95 = vector.broadcast %cst_35 : f32 to vector<8x256xf32>
    %96 = arith.addf %95, %94 : vector<8x256xf32>
    %97 = arith.mulf %86, %96 : vector<8x256xf32>
    %98 = arith.truncf %97 : vector<8x256xf32> to vector<8x256xbf16>
    %99 = arith.index_cast %c0_i32 : i32 to index
    %c0_36 = arith.constant 0 : index
    %c0_37 = arith.constant 0 : index
    %100 = vector.load %arg11[%99, %c0_36, %c0_37] : memref<2x256x128xbf16, #tpu.memory_space<vmem>>, vector<1x256x128xbf16>
    %101 = vector.shape_cast %100 : vector<1x256x128xbf16> to vector<256x128xbf16>
    %cst_38 = arith.constant dense<0.000000e+00> : vector<8x128xf32>
    %102 = tpu.matmul %98, %101, %cst_38 {dimension_numbers = #tpu.dot_dimension_numbers<[1], [0], [0], [1], [0, 0, 1, 1], [], []>} : vector<8x256xbf16>, vector<256x128xbf16>, vector<8x128xf32> -> vector<8x128xf32>
    %103 = arith.index_cast %c0_i32 : i32 to index
    %c0_39 = arith.constant 0 : index
    %c0_40 = arith.constant 0 : index
    %104 = vector.load %arg12[%103, %c0_39, %c0_40] : memref<2x1x128xf32, #tpu.memory_space<vmem>>, vector<1x1x128xf32>
    %105 = vector.shape_cast %104 : vector<1x1x128xf32> to vector<1x128xf32>
    %106 = vector.broadcast %105 : vector<1x128xf32> to vector<8x128xf32>
    %107 = arith.addf %102, %106 : vector<8x128xf32>
    %108 = arith.addf %74, %107 : vector<8x128xf32>
    %109 = arith.index_cast %c0_i32 : i32 to index
    %c0_41 = arith.constant 0 : index
    %c0_42 = arith.constant 0 : index
    %110 = vector.load %arg13[%109, %c0_41, %c0_42] : memref<2x1x128xf32, #tpu.memory_space<vmem>>, vector<1x1x128xf32>
    %111 = vector.shape_cast %110 : vector<1x1x128xf32> to vector<1x128xf32>
    %112 = arith.index_cast %c0_i32 : i32 to index
    %c0_43 = arith.constant 0 : index
    %c0_44 = arith.constant 0 : index
    %113 = vector.load %arg14[%112, %c0_43, %c0_44] : memref<2x1x128xf32, #tpu.memory_space<vmem>>, vector<1x1x128xf32>
    %114 = vector.shape_cast %113 : vector<1x1x128xf32> to vector<1x128xf32>
    %cst_45 = arith.constant dense<0.000000e+00> : vector<8xf32>
    %115 = vector.multi_reduction <add>, %108, %cst_45 [1] : vector<8x128xf32> to vector<8xf32>
    %116 = vector.shape_cast %115 : vector<8xf32> to vector<8x1xf32>
    %cst_46 = arith.constant 1.280000e+02 : f32
    %117 = vector.broadcast %cst_46 : f32 to vector<8x1xf32>
    %118 = arith.divf %116, %117 : vector<8x1xf32>
    %119 = vector.broadcast %118 : vector<8x1xf32> to vector<8x128xf32>
    %120 = arith.subf %108, %119 : vector<8x128xf32>
    %121 = arith.mulf %120, %120 : vector<8x128xf32>
    %cst_47 = arith.constant dense<0.000000e+00> : vector<8xf32>
    %122 = vector.multi_reduction <add>, %121, %cst_47 [1] : vector<8x128xf32> to vector<8xf32>
    %123 = vector.shape_cast %122 : vector<8xf32> to vector<8x1xf32>
    %cst_48 = arith.constant 1.280000e+02 : f32
    %124 = vector.broadcast %cst_48 : f32 to vector<8x1xf32>
    %125 = arith.divf %123, %124 : vector<8x1xf32>
    %126 = vector.broadcast %118 : vector<8x1xf32> to vector<8x128xf32>
    %127 = arith.subf %108, %126 : vector<8x128xf32>
    %cst_49 = arith.constant 9.99999996E-13 : f32
    %128 = vector.broadcast %cst_49 : f32 to vector<8x1xf32>
    %129 = arith.addf %125, %128 : vector<8x1xf32>
    %130 = math.rsqrt %129 : vector<8x1xf32>
    %131 = vector.broadcast %130 : vector<8x1xf32> to vector<8x128xf32>
    %132 = arith.mulf %127, %131 : vector<8x128xf32>
    %133 = vector.broadcast %111 : vector<1x128xf32> to vector<8x128xf32>
    %134 = arith.mulf %132, %133 : vector<8x128xf32>
    %135 = vector.broadcast %114 : vector<1x128xf32> to vector<8x128xf32>
    %136 = arith.addf %134, %135 : vector<8x128xf32>
    %c1_i32 = arith.constant 1 : i32
    %137 = arith.truncf %136 : vector<8x128xf32> to vector<8x128xbf16>
    %138 = arith.index_cast %c1_i32 : i32 to index
    %c0_50 = arith.constant 0 : index
    %c0_51 = arith.constant 0 : index
    %139 = vector.load %arg3[%138, %c0_50, %c0_51] : memref<2x128x384xbf16, #tpu.memory_space<vmem>>, vector<1x128x384xbf16>
    %140 = vector.shape_cast %139 : vector<1x128x384xbf16> to vector<128x384xbf16>
    %cst_52 = arith.constant dense<0.000000e+00> : vector<8x384xf32>
    %141 = tpu.matmul %137, %140, %cst_52 {dimension_numbers = #tpu.dot_dimension_numbers<[1], [0], [0], [1], [0, 0, 1, 1], [], []>} : vector<8x128xbf16>, vector<128x384xbf16>, vector<8x384xf32> -> vector<8x384xf32>
    %142 = arith.index_cast %c1_i32 : i32 to index
    %c0_53 = arith.constant 0 : index
    %c0_54 = arith.constant 0 : index
    %143 = vector.load %arg4[%142, %c0_53, %c0_54] : memref<2x1x384xf32, #tpu.memory_space<vmem>>, vector<1x1x384xf32>
    %144 = vector.shape_cast %143 : vector<1x1x384xf32> to vector<1x384xf32>
    %145 = vector.broadcast %144 : vector<1x384xf32> to vector<8x384xf32>
    %146 = arith.addf %141, %145 : vector<8x384xf32>
    %147 = vector.shape_cast %146 : vector<8x384xf32> to vector<8x6x64xf32>
    %148 = tpu.transpose %147, [1, 0, 2] : vector<8x6x64xf32> -> vector<6x8x64xf32>
    %149 = vector.extract_strided_slice %148 {offsets = [0, 0, 0], sizes = [2, 8, 64], strides = [1, 1, 1]} : vector<6x8x64xf32> to vector<2x8x64xf32>
    %150 = vector.extract_strided_slice %148 {offsets = [2, 0, 0], sizes = [2, 8, 64], strides = [1, 1, 1]} : vector<6x8x64xf32> to vector<2x8x64xf32>
    %151 = vector.extract_strided_slice %148 {offsets = [4, 0, 0], sizes = [2, 8, 64], strides = [1, 1, 1]} : vector<6x8x64xf32> to vector<2x8x64xf32>
    "tpu.trace_start"() <{level = 10 : i32, message = "hqd,hkd->hqk"}> : () -> ()
    %cst_55 = arith.constant dense<0.000000e+00> : vector<2x8x8xf32>
    %152 = tpu.matmul %149, %150, %cst_55 {dimension_numbers = #tpu.dot_dimension_numbers<[2], [2], [1], [1], [0, 0, 0, 1, 1, 1], [0], [0]>} : vector<2x8x64xf32>, vector<2x8x64xf32>, vector<2x8x8xf32> -> vector<2x8x8xf32>
    "tpu.trace_stop"() : () -> ()
    %153 = vector.shape_cast %1 : vector<1x8xf32> to vector<1x1x8xf32>
    %154 = vector.broadcast %153 : vector<1x1x8xf32> to vector<2x8x8xf32>
    %155 = arith.addf %152, %154 : vector<2x8x8xf32>
    %cst_56 = arith.constant dense<0xFF800000> : vector<2x8xf32>
    %156 = vector.multi_reduction <maximumf>, %155, %cst_56 [2] : vector<2x8x8xf32> to vector<2x8xf32>
    %157 = vector.shape_cast %156 : vector<2x8xf32> to vector<2x8x1xf32>
    %158 = vector.broadcast %157 : vector<2x8x1xf32> to vector<2x8x8xf32>
    %159 = arith.subf %155, %158 : vector<2x8x8xf32>
    %160 = math.exp %159 : vector<2x8x8xf32>
    %cst_57 = arith.constant dense<0.000000e+00> : vector<2x8xf32>
    %161 = vector.multi_reduction <add>, %160, %cst_57 [2] : vector<2x8x8xf32> to vector<2x8xf32>
    %162 = vector.shape_cast %161 : vector<2x8xf32> to vector<2x8x1xf32>
    %163 = tpu.reciprocal %162 {approx = true} : vector<2x8x1xf32> -> vector<2x8x1xf32>
    %164 = vector.broadcast %163 : vector<2x8x1xf32> to vector<2x8x8xf32>
    %165 = arith.mulf %160, %164 : vector<2x8x8xf32>
    "tpu.trace_start"() <{level = 10 : i32, message = "hqk,hkd->hqd"}> : () -> ()
    %cst_58 = arith.constant dense<0.000000e+00> : vector<2x8x64xf32>
    %166 = tpu.matmul %165, %151, %cst_58 {dimension_numbers = #tpu.dot_dimension_numbers<[2], [1], [1], [2], [0, 0, 0, 1, 1, 2], [0], [0]>} : vector<2x8x8xf32>, vector<2x8x64xf32>, vector<2x8x64xf32> -> vector<2x8x64xf32>
    "tpu.trace_stop"() : () -> ()
    %167 = tpu.transpose %166, [1, 0, 2] : vector<2x8x64xf32> -> vector<8x2x64xf32>
    %168 = vector.shape_cast %167 : vector<8x2x64xf32> to vector<8x128xf32>
    %169 = arith.truncf %168 : vector<8x128xf32> to vector<8x128xbf16>
    %170 = arith.index_cast %c1_i32 : i32 to index
    %c0_59 = arith.constant 0 : index
    %c0_60 = arith.constant 0 : index
    %171 = vector.load %arg5[%170, %c0_59, %c0_60] : memref<2x128x128xbf16, #tpu.memory_space<vmem>>, vector<1x128x128xbf16>
    %172 = vector.shape_cast %171 : vector<1x128x128xbf16> to vector<128x128xbf16>
    %cst_61 = arith.constant dense<0.000000e+00> : vector<8x128xf32>
    %173 = tpu.matmul %169, %172, %cst_61 {dimension_numbers = #tpu.dot_dimension_numbers<[1], [0], [0], [1], [0, 0, 1, 1], [], []>} : vector<8x128xbf16>, vector<128x128xbf16>, vector<8x128xf32> -> vector<8x128xf32>
    %174 = arith.index_cast %c1_i32 : i32 to index
    %c0_62 = arith.constant 0 : index
    %c0_63 = arith.constant 0 : index
    %175 = vector.load %arg6[%174, %c0_62, %c0_63] : memref<2x1x128xf32, #tpu.memory_space<vmem>>, vector<1x1x128xf32>
    %176 = vector.shape_cast %175 : vector<1x1x128xf32> to vector<1x128xf32>
    %177 = vector.broadcast %176 : vector<1x128xf32> to vector<8x128xf32>
    %178 = arith.addf %173, %177 : vector<8x128xf32>
    %179 = arith.addf %136, %178 : vector<8x128xf32>
    %180 = arith.index_cast %c1_i32 : i32 to index
    %c0_64 = arith.constant 0 : index
    %c0_65 = arith.constant 0 : index
    %181 = vector.load %arg7[%180, %c0_64, %c0_65] : memref<2x1x128xf32, #tpu.memory_space<vmem>>, vector<1x1x128xf32>
    %182 = vector.shape_cast %181 : vector<1x1x128xf32> to vector<1x128xf32>
    %183 = arith.index_cast %c1_i32 : i32 to index
    %c0_66 = arith.constant 0 : index
    %c0_67 = arith.constant 0 : index
    %184 = vector.load %arg8[%183, %c0_66, %c0_67] : memref<2x1x128xf32, #tpu.memory_space<vmem>>, vector<1x1x128xf32>
    %185 = vector.shape_cast %184 : vector<1x1x128xf32> to vector<1x128xf32>
    %cst_68 = arith.constant dense<0.000000e+00> : vector<8xf32>
    %186 = vector.multi_reduction <add>, %179, %cst_68 [1] : vector<8x128xf32> to vector<8xf32>
    %187 = vector.shape_cast %186 : vector<8xf32> to vector<8x1xf32>
    %cst_69 = arith.constant 1.280000e+02 : f32
    %188 = vector.broadcast %cst_69 : f32 to vector<8x1xf32>
    %189 = arith.divf %187, %188 : vector<8x1xf32>
    %190 = vector.broadcast %189 : vector<8x1xf32> to vector<8x128xf32>
    %191 = arith.subf %179, %190 : vector<8x128xf32>
    %192 = arith.mulf %191, %191 : vector<8x128xf32>
    %cst_70 = arith.constant dense<0.000000e+00> : vector<8xf32>
    %193 = vector.multi_reduction <add>, %192, %cst_70 [1] : vector<8x128xf32> to vector<8xf32>
    %194 = vector.shape_cast %193 : vector<8xf32> to vector<8x1xf32>
    %cst_71 = arith.constant 1.280000e+02 : f32
    %195 = vector.broadcast %cst_71 : f32 to vector<8x1xf32>
    %196 = arith.divf %194, %195 : vector<8x1xf32>
    %197 = vector.broadcast %189 : vector<8x1xf32> to vector<8x128xf32>
    %198 = arith.subf %179, %197 : vector<8x128xf32>
    %cst_72 = arith.constant 9.99999996E-13 : f32
    %199 = vector.broadcast %cst_72 : f32 to vector<8x1xf32>
    %200 = arith.addf %196, %199 : vector<8x1xf32>
    %201 = math.rsqrt %200 : vector<8x1xf32>
    %202 = vector.broadcast %201 : vector<8x1xf32> to vector<8x128xf32>
    %203 = arith.mulf %198, %202 : vector<8x128xf32>
    %204 = vector.broadcast %182 : vector<1x128xf32> to vector<8x128xf32>
    %205 = arith.mulf %203, %204 : vector<8x128xf32>
    %206 = vector.broadcast %185 : vector<1x128xf32> to vector<8x128xf32>
    %207 = arith.addf %205, %206 : vector<8x128xf32>
    %208 = arith.truncf %207 : vector<8x128xf32> to vector<8x128xbf16>
    %209 = arith.index_cast %c1_i32 : i32 to index
    %c0_73 = arith.constant 0 : index
    %c0_74 = arith.constant 0 : index
    %210 = vector.load %arg9[%209, %c0_73, %c0_74] : memref<2x128x256xbf16, #tpu.memory_space<vmem>>, vector<1x128x256xbf16>
    %211 = vector.shape_cast %210 : vector<1x128x256xbf16> to vector<128x256xbf16>
    %cst_75 = arith.constant dense<0.000000e+00> : vector<8x256xf32>
    %212 = tpu.matmul %208, %211, %cst_75 {dimension_numbers = #tpu.dot_dimension_numbers<[1], [0], [0], [1], [0, 0, 1, 1], [], []>} : vector<8x128xbf16>, vector<128x256xbf16>, vector<8x256xf32> -> vector<8x256xf32>
    %213 = arith.index_cast %c1_i32 : i32 to index
    %c0_76 = arith.constant 0 : index
    %c0_77 = arith.constant 0 : index
    %214 = vector.load %arg10[%213, %c0_76, %c0_77] : memref<2x1x256xf32, #tpu.memory_space<vmem>>, vector<1x1x256xf32>
    %215 = vector.shape_cast %214 : vector<1x1x256xf32> to vector<1x256xf32>
    %216 = vector.broadcast %215 : vector<1x256xf32> to vector<8x256xf32>
    %217 = arith.addf %212, %216 : vector<8x256xf32>
    %cst_78 = arith.constant 5.000000e-01 : f32
    %218 = vector.broadcast %cst_78 : f32 to vector<8x256xf32>
    %219 = arith.mulf %218, %217 : vector<8x256xf32>
    %cst_79 = arith.constant 4.471500e-02 : f32
    %220 = vector.broadcast %cst_79 : f32 to vector<8x256xf32>
    %221 = arith.mulf %220, %217 : vector<8x256xf32>
    %222 = arith.mulf %221, %217 : vector<8x256xf32>
    %223 = arith.mulf %222, %217 : vector<8x256xf32>
    %224 = arith.addf %217, %223 : vector<8x256xf32>
    %cst_80 = arith.constant 0.797884583 : f32
    %225 = vector.broadcast %cst_80 : f32 to vector<8x256xf32>
    %226 = arith.mulf %225, %224 : vector<8x256xf32>
    %227 = math.tanh %226 : vector<8x256xf32>
    %cst_81 = arith.constant 1.000000e+00 : f32
    %228 = vector.broadcast %cst_81 : f32 to vector<8x256xf32>
    %229 = arith.addf %228, %227 : vector<8x256xf32>
    %230 = arith.mulf %219, %229 : vector<8x256xf32>
    %231 = arith.truncf %230 : vector<8x256xf32> to vector<8x256xbf16>
    %232 = arith.index_cast %c1_i32 : i32 to index
    %c0_82 = arith.constant 0 : index
    %c0_83 = arith.constant 0 : index
    %233 = vector.load %arg11[%232, %c0_82, %c0_83] : memref<2x256x128xbf16, #tpu.memory_space<vmem>>, vector<1x256x128xbf16>
    %234 = vector.shape_cast %233 : vector<1x256x128xbf16> to vector<256x128xbf16>
    %cst_84 = arith.constant dense<0.000000e+00> : vector<8x128xf32>
    %235 = tpu.matmul %231, %234, %cst_84 {dimension_numbers = #tpu.dot_dimension_numbers<[1], [0], [0], [1], [0, 0, 1, 1], [], []>} : vector<8x256xbf16>, vector<256x128xbf16>, vector<8x128xf32> -> vector<8x128xf32>
    %236 = arith.index_cast %c1_i32 : i32 to index
    %c0_85 = arith.constant 0 : index
    %c0_86 = arith.constant 0 : index
    %237 = vector.load %arg12[%236, %c0_85, %c0_86] : memref<2x1x128xf32, #tpu.memory_space<vmem>>, vector<1x1x128xf32>
    %238 = vector.shape_cast %237 : vector<1x1x128xf32> to vector<1x128xf32>
    %239 = vector.broadcast %238 : vector<1x128xf32> to vector<8x128xf32>
    %240 = arith.addf %235, %239 : vector<8x128xf32>
    %241 = arith.addf %207, %240 : vector<8x128xf32>
    %242 = arith.index_cast %c1_i32 : i32 to index
    %c0_87 = arith.constant 0 : index
    %c0_88 = arith.constant 0 : index
    %243 = vector.load %arg13[%242, %c0_87, %c0_88] : memref<2x1x128xf32, #tpu.memory_space<vmem>>, vector<1x1x128xf32>
    %244 = vector.shape_cast %243 : vector<1x1x128xf32> to vector<1x128xf32>
    %245 = arith.index_cast %c1_i32 : i32 to index
    %c0_89 = arith.constant 0 : index
    %c0_90 = arith.constant 0 : index
    %246 = vector.load %arg14[%245, %c0_89, %c0_90] : memref<2x1x128xf32, #tpu.memory_space<vmem>>, vector<1x1x128xf32>
    %247 = vector.shape_cast %246 : vector<1x1x128xf32> to vector<1x128xf32>
    %cst_91 = arith.constant dense<0.000000e+00> : vector<8xf32>
    %248 = vector.multi_reduction <add>, %241, %cst_91 [1] : vector<8x128xf32> to vector<8xf32>
    %249 = vector.shape_cast %248 : vector<8xf32> to vector<8x1xf32>
    %cst_92 = arith.constant 1.280000e+02 : f32
    %250 = vector.broadcast %cst_92 : f32 to vector<8x1xf32>
    %251 = arith.divf %249, %250 : vector<8x1xf32>
    %252 = vector.broadcast %251 : vector<8x1xf32> to vector<8x128xf32>
    %253 = arith.subf %241, %252 : vector<8x128xf32>
    %254 = arith.mulf %253, %253 : vector<8x128xf32>
    %cst_93 = arith.constant dense<0.000000e+00> : vector<8xf32>
    %255 = vector.multi_reduction <add>, %254, %cst_93 [1] : vector<8x128xf32> to vector<8xf32>
    %256 = vector.shape_cast %255 : vector<8xf32> to vector<8x1xf32>
    %cst_94 = arith.constant 1.280000e+02 : f32
    %257 = vector.broadcast %cst_94 : f32 to vector<8x1xf32>
    %258 = arith.divf %256, %257 : vector<8x1xf32>
    %259 = vector.broadcast %251 : vector<8x1xf32> to vector<8x128xf32>
    %260 = arith.subf %241, %259 : vector<8x128xf32>
    %cst_95 = arith.constant 9.99999996E-13 : f32
    %261 = vector.broadcast %cst_95 : f32 to vector<8x1xf32>
    %262 = arith.addf %258, %261 : vector<8x1xf32>
    %263 = math.rsqrt %262 : vector<8x1xf32>
    %264 = vector.broadcast %263 : vector<8x1xf32> to vector<8x128xf32>
    %265 = arith.mulf %260, %264 : vector<8x128xf32>
    %266 = vector.broadcast %244 : vector<1x128xf32> to vector<8x128xf32>
    %267 = arith.mulf %265, %266 : vector<8x128xf32>
    %268 = vector.broadcast %247 : vector<1x128xf32> to vector<8x128xf32>
    %269 = arith.addf %267, %268 : vector<8x128xf32>
    %c2_i32 = arith.constant 2 : i32
    %270 = vector.extract_strided_slice %269 {offsets = [0, 0], sizes = [1, 128], strides = [1, 1]} : vector<8x128xf32> to vector<1x128xf32>
    %271 = arith.truncf %270 : vector<1x128xf32> to vector<1x128xbf16>
    %c0_96 = arith.constant 0 : index
    %c0_97 = arith.constant 0 : index
    %272 = vector.load %arg15[%c0_96, %c0_97] : memref<128x128xbf16, #tpu.memory_space<vmem>>, vector<128x128xbf16>
    %cst_98 = arith.constant dense<0.000000e+00> : vector<1x128xf32>
    %273 = tpu.matmul %271, %272, %cst_98 {dimension_numbers = #tpu.dot_dimension_numbers<[1], [0], [0], [1], [0, 0, 1, 1], [], []>} : vector<1x128xbf16>, vector<128x128xbf16>, vector<1x128xf32> -> vector<1x128xf32>
    %c0_99 = arith.constant 0 : index
    %c0_100 = arith.constant 0 : index
    %274 = vector.load %arg16[%c0_99, %c0_100] : memref<1x128xf32, #tpu.memory_space<vmem>>, vector<1x128xf32>
    %275 = arith.addf %273, %274 : vector<1x128xf32>
    %276 = math.tanh %275 : vector<1x128xf32>
    %277 = arith.truncf %276 : vector<1x128xf32> to vector<1x128xbf16>
    %c0_101 = arith.constant 0 : index
    %c0_102 = arith.constant 0 : index
    %278 = vector.load %arg17[%c0_101, %c0_102] : memref<128x128xbf16, #tpu.memory_space<vmem>>, vector<128x128xbf16>
    %cst_103 = arith.constant dense<0.000000e+00> : vector<1x128xf32>
    %279 = tpu.matmul %277, %278, %cst_103 {dimension_numbers = #tpu.dot_dimension_numbers<[1], [0], [0], [1], [0, 0, 1, 1], [], []>} : vector<1x128xbf16>, vector<128x128xbf16>, vector<1x128xf32> -> vector<1x128xf32>
    %c0_104 = arith.constant 0 : index
    %c0_105 = arith.constant 0 : index
    %280 = vector.load %arg18[%c0_104, %c0_105] : memref<1x128xf32, #tpu.memory_space<vmem>>, vector<1x128xf32>
    %281 = arith.addf %279, %280 : vector<1x128xf32>
    %282 = vector.shape_cast %281 : vector<1x128xf32> to vector<1x1x128xf32>
    %c0_106 = arith.constant 0 : index
    %c0_107 = arith.constant 0 : index
    %c0_108 = arith.constant 0 : index
    %283 = vector.load %arg19[%c0_106, %c0_107, %c0_108] : memref<1x1x128xf32, #tpu.memory_space<vmem>>, vector<1x1x128xf32>
    tpu.vector_store %arg19[%c0_106, %c0_107, %c0_108], %282 {strides = array<i32>} : memref<1x1x128xf32, #tpu.memory_space<vmem>>, vector<1x1x128xf32>,
    return
  }
  func.func @transform_0(%arg0: i32) -> (i32, i32, i32) {
    %c0_i32 = arith.constant 0 : i32
    %c0_i32_0 = arith.constant 0 : i32
    %c0_i32_1 = arith.constant 0 : i32
    return %arg0, %c0_i32, %c0_i32_0 : i32, i32, i32
  }
  func.func @transform_1(%arg0: i32) -> (i32, i32, i32) {
    %c0_i32 = arith.constant 0 : i32
    %c0_i32_0 = arith.constant 0 : i32
    %c0_i32_1 = arith.constant 0 : i32
    return %arg0, %c0_i32, %c0_i32_0 : i32, i32, i32
  }
  func.func @transform_2(%arg0: i32) -> (i32, i32, i32) {
    %c0_i32 = arith.constant 0 : i32
    %c0_i32_0 = arith.constant 0 : i32
    %c0_i32_1 = arith.constant 0 : i32
    %c0_i32_2 = arith.constant 0 : i32
    return %c0_i32, %c0_i32_0, %c0_i32_1 : i32, i32, i32
  }
  func.func @transform_3(%arg0: i32) -> (i32, i32, i32) {
    %c0_i32 = arith.constant 0 : i32
    %c0_i32_0 = arith.constant 0 : i32
    %c0_i32_1 = arith.constant 0 : i32
    %c0_i32_2 = arith.constant 0 : i32
    return %c0_i32, %c0_i32_0, %c0_i32_1 : i32, i32, i32
  }
  func.func @transform_4(%arg0: i32) -> (i32, i32, i32) {
    %c0_i32 = arith.constant 0 : i32
    %c0_i32_0 = arith.constant 0 : i32
    %c0_i32_1 = arith.constant 0 : i32
    %c0_i32_2 = arith.constant 0 : i32
    return %c0_i32, %c0_i32_0, %c0_i32_1 : i32, i32, i32
  }
  func.func @transform_5(%arg0: i32) -> (i32, i32, i32) {
    %c0_i32 = arith.constant 0 : i32
    %c0_i32_0 = arith.constant 0 : i32
    %c0_i32_1 = arith.constant 0 : i32
    %c0_i32_2 = arith.constant 0 : i32
    return %c0_i32, %c0_i32_0, %c0_i32_1 : i32, i32, i32
  }
  func.func @transform_6(%arg0: i32) -> (i32, i32, i32) {
    %c0_i32 = arith.constant 0 : i32
    %c0_i32_0 = arith.constant 0 : i32
    %c0_i32_1 = arith.constant 0 : i32
    %c0_i32_2 = arith.constant 0 : i32
    return %c0_i32, %c0_i32_0, %c0_i32_1 : i32, i32, i32
  }
  func.func @transform_7(%arg0: i32) -> (i32, i32, i32) {
    %c0_i32 = arith.constant 0 : i32
    %c0_i32_0 = arith.constant 0 : i32
    %c0_i32_1 = arith.constant 0 : i32
    %c0_i32_2 = arith.constant 0 : i32
    return %c0_i32, %c0_i32_0, %c0_i32_1 : i32, i32, i32
  }
  func.func @transform_8(%arg0: i32) -> (i32, i32, i32) {
    %c0_i32 = arith.constant 0 : i32
    %c0_i32_0 = arith.constant 0 : i32
    %c0_i32_1 = arith.constant 0 : i32
    %c0_i32_2 = arith.constant 0 : i32
    return %c0_i32, %c0_i32_0, %c0_i32_1 : i32, i32, i32
  }
  func.func @transform_9(%arg0: i32) -> (i32, i32, i32) {
    %c0_i32 = arith.constant 0 : i32
    %c0_i32_0 = arith.constant 0 : i32
    %c0_i32_1 = arith.constant 0 : i32
    %c0_i32_2 = arith.constant 0 : i32
    return %c0_i32, %c0_i32_0, %c0_i32_1 : i32, i32, i32
  }
  func.func @transform_10(%arg0: i32) -> (i32, i32, i32) {
    %c0_i32 = arith.constant 0 : i32
    %c0_i32_0 = arith.constant 0 : i32
    %c0_i32_1 = arith.constant 0 : i32
    %c0_i32_2 = arith.constant 0 : i32
    return %c0_i32, %c0_i32_0, %c0_i32_1 : i32, i32, i32
  }
  func.func @transform_11(%arg0: i32) -> (i32, i32, i32) {
    %c0_i32 = arith.constant 0 : i32
    %c0_i32_0 = arith.constant 0 : i32
    %c0_i32_1 = arith.constant 0 : i32
    %c0_i32_2 = arith.constant 0 : i32
    return %c0_i32, %c0_i32_0, %c0_i32_1 : i32, i32, i32
  }
  func.func @transform_12(%arg0: i32) -> (i32, i32, i32) {
    %c0_i32 = arith.constant 0 : i32
    %c0_i32_0 = arith.constant 0 : i32
    %c0_i32_1 = arith.constant 0 : i32
    %c0_i32_2 = arith.constant 0 : i32
    return %c0_i32, %c0_i32_0, %c0_i32_1 : i32, i32, i32
  }
  func.func @transform_13(%arg0: i32) -> (i32, i32, i32) {
    %c0_i32 = arith.constant 0 : i32
    %c0_i32_0 = arith.constant 0 : i32
    %c0_i32_1 = arith.constant 0 : i32
    %c0_i32_2 = arith.constant 0 : i32
    return %c0_i32, %c0_i32_0, %c0_i32_1 : i32, i32, i32
  }
  func.func @transform_14(%arg0: i32) -> (i32, i32) {
    %c0_i32 = arith.constant 0 : i32
    %c0_i32_0 = arith.constant 0 : i32
    %c0_i32_1 = arith.constant 0 : i32
    return %c0_i32, %c0_i32_0 : i32, i32
  }
  func.func @transform_15(%arg0: i32) -> (i32, i32) {
    %c0_i32 = arith.constant 0 : i32
    %c0_i32_0 = arith.constant 0 : i32
    %c0_i32_1 = arith.constant 0 : i32
    return %c0_i32, %c0_i32_0 : i32, i32
  }
  func.func @transform_16(%arg0: i32) -> (i32, i32) {
    %c0_i32 = arith.constant 0 : i32
    %c0_i32_0 = arith.constant 0 : i32
    %c0_i32_1 = arith.constant 0 : i32
    return %c0_i32, %c0_i32_0 : i32, i32
  }
  func.func @transform_17(%arg0: i32) -> (i32, i32) {
    %c0_i32 = arith.constant 0 : i32
    %c0_i32_0 = arith.constant 0 : i32
    %c0_i32_1 = arith.constant 0 : i32
    return %c0_i32, %c0_i32_0 : i32, i32
  }
  func.func @transform_18(%arg0: i32) -> (i32, i32, i32) {
    %c0_i32 = arith.constant 0 : i32
    %c0_i32_0 = arith.constant 0 : i32
    %c0_i32_1 = arith.constant 0 : i32
    return %arg0, %c0_i32, %c0_i32_0 : i32, i32, i32
  }
}

</mosaic_0001>

<bundles_post_ra>
// kernel: turkish_hate_bert_forward.1
= control target key start
LH: loop header
LB: loop body
LE: loop exit
PB: predicated region body
PF: predicated region fallthrough
CT: control target
= control target key end

     0   :  { %s5901_s0 = inlined_call_operand.vmem [shape: f32[2,8,128], index: 0, kind: input, shape index: {}]   ;;  %s5902_s1 = inlined_call_operand.vmem [shape: f32[2,1,8], index: 1, kind: input, shape index: {}]   ;;  %s5903_s2 = inlined_call_operand.hbm [shape: bf16[2,128,384], index: 2, kind: input, shape index: {}]   ;;  %s5904_s3 = inlined_call_operand.vmem [shape: f32[2,1,384], index: 3, kind: input, shape index: {}]   ;;  %s5905_s4 = inlined_call_operand.hbm [shape: bf16[2,128,128], index: 4, kind: input, shape index: {}]   ;;  %s5906_s5 = inlined_call_operand.vmem [shape: f32[2,1,128], index: 5, kind: input, shape index: {}]   ;;  %s5907_s6 = inlined_call_operand.hbm [shape: f32[2,1,128], index: 6, kind: input, shape index: {}]   ;;  %s5908_s7 = inlined_call_operand.vmem [shape: f32[2,1,128], index: 7, kind: input, shape index: {}]   ;;  %s5909_s8 = inlined_call_operand.vmem [shape: bf16[2,128,256], index: 8, kind: input, shape index: {}]   ;;  %s5910_s9 = inlined_call_operand.vmem [shape: f32[2,1,256], index: 9, kind: input, shape index: {}]   ;;  %s5911_s10 = inlined_call_operand.hbm [shape: bf16[2,256,128], index: 10, kind: input, shape index: {}]   ;;  %s5912_s11 = inlined_call_operand.vmem [shape: f32[2,1,128], index: 11, kind: input, shape index: {}]   ;;  %s5913_s12 = inlined_call_operand.hbm [shape: f32[2,1,128], index: 12, kind: input, shape index: {}]   ;;  %s5914_s13 = inlined_call_operand.vmem [shape: f32[2,1,128], index: 13, kind: input, shape index: {}]   ;;  %s5915_s14 = inlined_call_operand.vmem [shape: bf16[128,128], index: 14, kind: input, shape index: {}]   ;;  %s5916_s15 = inlined_call_operand.hbm [shape: f32[1,128], index: 15, kind: input, shape index: {}]   ;;  %s5917_s16 = inlined_call_operand.hbm [shape: bf16[128,128], index: 16, kind: input, shape index: {}]   ;;  %s5918_s17 = inlined_call_operand.hbm [shape: f32[1,128], index: 17, kind: input, shape index: {}]   ;;  %s5919_s18 = inlined_call_operand.vmem [shape: f32[2,1,128], index: 18, kind: output, shape index: {}]  }
   0x1   :  { %5929 = sst [smem:[#allocation21_spill]] %s5901_s0 }
   0x2   :  { %5930 = sst [smem:[#allocation22_spill]] %s5902_s1 }
   0x3   :  { %5931 = sst [smem:[#allocation23_spill]] %s5903_s2 }
   0x4   :  { %5932 = sst [smem:[#allocation24_spill]] %s5912_s11 }
   0x5   :  { %5933 = sst [smem:[#allocation25_spill]] %s5914_s13 }
   0x6   :  { %5934 = sst [smem:[#allocation26_spill]] %s5915_s14 }
   0x7   :  { %5935 = sst [smem:[#allocation27_spill]] %s5919_s18 }
   0x8   :  { %23 = vsyncpa [#allocation3], 0 }
   0x9   :  { %24 = vsyncpa [#allocation5], 0 }
   0xa   :  { %25 = vsyncpa [#allocation8], 0 }
   0xb   :  { %26 = vsyncpa [#allocation11], 0 }
   0xc   :  { %27 = vsyncpa [#allocation14], 0  ;;  %s5210_s27 = smov 0  }
   0xd LB: > { %5936 = sst [smem:[#allocation20_spill]] %s5093_s27  ;;  %s5095_s28 = smov [#allocation4]   ;;  %s5093_s27 = sphi %s5210_s27, %s33_s27  }
   0xe   : > { %s480_s29 = sshll.u32 %s5095_s28, 4  ;;  %s5216_s30 = sadd.s32 4294967295, %s5093_s27   ;;  %s5221_s29 = int_to_ptr.vmem [resolvable:$true] %s480_s29 }
   0xf   : > { %p4025_p0 = scmp.ge.s32.totalorder %s5093_s27, 1  ;;  %p452_p1 = scmp.lt.s32.totalorder %s5093_s27, 3 }
  0x10   : > { %p5925_p2 = scmp.eq.s32.totalorder %s5216_s30, 0  ;;  %s5096_s19 = smov [#allocation7]  }
  0x11   : > { %p5223_p3 = pnand %p4025_p0, %p452_p1  ;;  %s518_s1 = sshll.u32 %s5096_s19, 4  ;;  %s5229_s1 = int_to_ptr.vmem [resolvable:$true] %s518_s1 }
  0x12   : > { %s5097_s21 = smov [#allocation10]   ;;  %s5098_s2 = smov [#allocation2]  }
  0x13   : > { %s5937_s0 = scalar_select %p5223_p3, 1, 0 }
  0x14   : > { %p4564_p4 = pneg %p5223_p3  ;;  %s554_s22 = sshll.u32 %s5097_s21, 4  ;;  %s5237_s22 = int_to_ptr.vmem [resolvable:$true] %s554_s22 }
  0x15   : > { %s5239_s23 = sshll.u32 %s5098_s2, 4  ;;  %s4843_s26 = scalar_lea.hbm %s5905_s4, 2048  ;;  %s465_s23 = int_to_ptr.vmem [resolvable:$true] %s5239_s23 }
  0x16   : > { %p5233_p5 = pnand %p5925_p2, %p4564_p4  ;;  %p4844_p6 = scmp.ne.s32.totalorder %s5905_s4, %s4843_s26 }
  0x17   : > { %p4850_p10 = scmp.lt.u32.totalorder %s4843_s26, %s5905_s4 }
  0x18   : > { %p5249_p7 = pneg %p5233_p5 }
  0x1a   : > { %p4846_p8 = pnand %p5249_p7, %p4844_p6 }
  0x1c   : > { %p4847_p9 = pneg %p4846_p8 }
  0x1e   : > { %p4852_p11 = pnand %p4850_p10, %p4847_p9 }
  0x20   : > { %4855 = shalt.err (!%p4852_p11)
}
  0x21   : > { %s4856_s24 = scalar_lea.vmem %s5221_s29, 2048  ;;  %p4864_p1 = scmp.lt.s32.totalorder %s5221_s29, %s5221_s29 }
  0x22   : > { %p4857_p12 = scmp.ne.s32.totalorder %s5221_s29, %s4856_s24  ;;  %p4865_p4 = scmp.lt.s32.totalorder %s4856_s24, %s4856_s24 }
  0x24   : > { %p4859_p13 = pnand %p4857_p12, %p5249_p7  ;;  %p4866_p6 = por %p4865_p4, %p4864_p1 }
  0x26   : > { %p4860_p0 = pneg %p4859_p13 }
  0x28   : > { %p4867_p8 = pnand %p4866_p6, %p4860_p0 }
  0x2a   : > { %4870 = shalt.err (!%p4867_p8)
}
  0x2b   : > { %s5927_s25 = smov 64   ;;  %s5928_s26 = smov 4  }
  0x2c   : > { %4570 = dma.hbm_to_vmem [thread:$0]  (!%p5233_p5), %s5905_s4, 2048, %s5221_s29, [#allocation5], %s5927_s25, %s5927_s25, %s5928_s26  }
  0x2d   : > { %s4871_s24 = scalar_lea.hbm %s5911_s10, 4096 }
  0x2e   : > { %p4872_p9 = scmp.ne.s32.totalorder %s5911_s10, %s4871_s24  ;;  %p4878_p12 = scmp.lt.u32.totalorder %s4871_s24, %s5911_s10 }
  0x30   : > { %p4874_p10 = pnand %p4872_p9, %p5249_p7 }
  0x32   : > { %p4875_p11 = pneg %p4874_p10 }
  0x34   : > { %p4880_p13 = pnand %p4878_p12, %p4875_p11 }
  0x36   : > { %4883 = shalt.err (!%p4880_p13)
}
  0x37   : > { %s4884_s29 = scalar_lea.vmem %s5229_s1, 4096  ;;  %p4892_p6 = scmp.lt.s32.totalorder %s5229_s1, %s5229_s1 }
  0x38   : > { %p4885_p0 = scmp.ne.s32.totalorder %s5229_s1, %s4884_s29  ;;  %p4893_p8 = scmp.lt.s32.totalorder %s4884_s29, %s4884_s29 }
  0x3a   : > { %p4887_p1 = pnand %p4885_p0, %p5249_p7  ;;  %p4894_p9 = por %p4893_p8, %p4892_p6 }
  0x3c   : > { %p4888_p4 = pneg %p4887_p1 }
  0x3e   : > { %p4895_p10 = pnand %p4894_p9, %p4888_p4 }
  0x40   : > { %4898 = shalt.err (!%p4895_p10)
}
  0x41   : > { %4576 = dma.hbm_to_vmem [thread:$0]  (!%p5233_p5), %s5911_s10, 4096, %s5229_s1, [#allocation8], %s5927_s25, %s5927_s25, %s5928_s26  }
  0x42   : > { %s4899_s28 = scalar_lea.hbm %s5916_s15, 16 }
  0x43   : > { %p4900_p11 = scmp.ne.s32.totalorder %s5916_s15, %s4899_s28  ;;  %p4906_p0 = scmp.lt.u32.totalorder %s4899_s28, %s5916_s15 }
  0x45   : > { %p4902_p12 = pnand %p4900_p11, %p5249_p7 }
  0x47   : > { %p4903_p13 = pneg %p4902_p12 }
  0x49   : > { %p4908_p1 = pnand %p4906_p0, %p4903_p13 }
  0x4b   : > { %4911 = shalt.err (!%p4908_p1)
}
  0x4c   : > { %s4912_s1 = scalar_lea.vmem %s5237_s22, 16  ;;  %s4919_s29 = scalar_lea.vmem %s5237_s22, 32 }
  0x4d   : > { %p4913_p4 = scmp.ne.s32.totalorder %s5237_s22, %s4912_s1  ;;  %p4920_p9 = scmp.lt.s32.totalorder %s5237_s22, %s5237_s22 }
  0x4e   : > { %p4921_p10 = scmp.lt.s32.totalorder %s4919_s29, %s4912_s1 }
  0x4f   : > { %p4915_p6 = pnand %p4913_p4, %p5249_p7 }
  0x50   : > { %p4922_p11 = por %p4921_p10, %p4920_p9 }
  0x51   : > { %p4916_p8 = pneg %p4915_p6 }
  0x53   : > { %p4923_p12 = pnand %p4922_p11, %p4916_p8 }
  0x55   : > { %4926 = shalt.err (!%p4923_p12)
}
  0x56   : > { %4582 = dma.hbm_to_vmem [thread:$0]  (!%p5233_p5), %s5916_s15, 16, %s5237_s22, [#allocation11]  }
  0x57   : > { %s5940_s28 = sld [smem:[#allocation23_spill]] }
  0x5d   : > { %s4927_s19 = scalar_lea.hbm %s5940_s28, 6144 }
  0x5e   : > { %p4928_p13 = scmp.ne.s32.totalorder %s5940_s28, %s4927_s19  ;;  %p4934_p4 = scmp.lt.u32.totalorder %s4927_s19, %s5940_s28 }
  0x60   : > { %p4930_p0 = pnand %p4928_p13, %p5249_p7 }
  0x62   : > { %p4931_p1 = pneg %p4930_p0 }
  0x64   : > { %p4936_p6 = pnand %p4934_p4, %p4931_p1 }
  0x66   : > { %4939 = shalt.err (!%p4936_p6)
}
  0x67   : > { %s4940_s29 = scalar_lea.vmem %s465_s23, 6144  ;;  %p4948_p11 = scmp.lt.s32.totalorder %s465_s23, %s465_s23 }
  0x68   : > { %p4941_p8 = scmp.ne.s32.totalorder %s465_s23, %s4940_s29  ;;  %p4949_p12 = scmp.lt.s32.totalorder %s4940_s29, %s4940_s29 }
  0x6a   : > { %p4943_p9 = pnand %p4941_p8, %p5249_p7  ;;  %p4950_p2 = por %p4949_p12, %p4948_p11 }
  0x6c   : > { %p4944_p10 = pneg %p4943_p9 }
  0x6e   : > { %p4951_p3 = pnand %p4950_p2, %p4944_p10 }
  0x70   : > { %4954 = shalt.err (!%p4951_p3)
}
  0x71   : > { %s5101_s22 = smov 192   ;;  %s5102_s11 = smov 12  }
  0x72   : > { %4567 = dma.hbm_to_vmem [thread:$0]  (!%p5233_p5), %s5940_s28, 6144, %s465_s23, [#allocation3], %s5101_s22, %s5101_s22, %s5102_s11  }
  0x73   : > { %s5103_s18 = smov [#allocation6]   ;;  %s4955_s24 = scalar_lea.hbm %s5907_s6, 32 }
  0x74   : > { %s496_s19 = sshll.u32 %s5103_s18, 4  ;;  %p4956_p2 = scmp.ne.s32.totalorder %s5907_s6, %s4955_s24  ;;  %s497_s19 = int_to_ptr.vmem [resolvable:$true] %s496_s19 }
  0x75   : > { %p4962_p0 = scmp.lt.u32.totalorder %s4955_s24, %s5907_s6 }
  0x76   : > { %p4958_p3 = pnand %p4956_p2, %p5249_p7 }
  0x78   : > { %p4959_p13 = pneg %p4958_p3 }
  0x7a   : > { %p4964_p1 = pnand %p4962_p0, %p4959_p13 }
  0x7c   : > { %4967 = shalt.err (!%p4964_p1)
}
  0x7d   : > { %s4968_s23 = scalar_lea.vmem %s497_s19, 32  ;;  %p4976_p9 = scmp.lt.s32.totalorder %s497_s19, %s497_s19 }
  0x7e   : > { %p4969_p4 = scmp.ne.s32.totalorder %s497_s19, %s4968_s23  ;;  %p4977_p10 = scmp.lt.s32.totalorder %s4968_s23, %s4968_s23 }
  0x80   : > { %p4971_p6 = pnand %p4969_p4, %p5249_p7  ;;  %p4978_p11 = por %p4977_p10, %p4976_p9 }
  0x82   : > { %p4972_p8 = pneg %p4971_p6 }
  0x84   : > { %p4979_p12 = pnand %p4978_p11, %p4972_p8 }
  0x86   : > { %4982 = shalt.err (!%p4979_p12)
}
  0x87   : > { %s5104_s22 = smov 16   ;;  %s5105_s11 = smov 1  }
  0x88   : > { %4573 = dma.hbm_to_vmem [thread:$0]  (!%p5233_p5), %s5907_s6, 32, %s497_s19, [#allocation5], %s5104_s22, %s5104_s22, %s5105_s11  }
  0x89   : > { %s5106_s13 = smov [#allocation9]   ;;  %s5107_s18 = smov [#allocation12]  }
  0x8a   : > { %s534_s14 = sshll.u32 %s5106_s13, 4  ;;  %s564_s21 = sshll.u32 %s5107_s18, 4  ;;  %s535_s14 = int_to_ptr.vmem [resolvable:$true] %s534_s14  ;;  %s5360_s21 = int_to_ptr.vmem [resolvable:$true] %s564_s21 }
  0x8b   : > { %s4983_s1 = scalar_lea.hbm %s5913_s12, 32 }
  0x8c   : > { %p4984_p2 = scmp.ne.s32.totalorder %s5913_s12, %s4983_s1  ;;  %p4990_p0 = scmp.lt.u32.totalorder %s4983_s1, %s5913_s12 }
  0x8e   : > { %p4986_p3 = pnand %p4984_p2, %p5249_p7 }
  0x90   : > { %p4987_p13 = pneg %p4986_p3 }
  0x92   : > { %p4992_p1 = pnand %p4990_p0, %p4987_p13 }
  0x94   : > { %4995 = shalt.err (!%p4992_p1)
}
  0x95   : > { %s4996_s26 = scalar_lea.vmem %s535_s14, 32  ;;  %p5004_p9 = scmp.lt.s32.totalorder %s535_s14, %s535_s14 }
  0x96   : > { %p4997_p4 = scmp.ne.s32.totalorder %s535_s14, %s4996_s26  ;;  %p5005_p10 = scmp.lt.s32.totalorder %s4996_s26, %s4996_s26 }
  0x98   : > { %p4999_p6 = pnand %p4997_p4, %p5249_p7  ;;  %p5006_p11 = por %p5005_p10, %p5004_p9 }
  0x9a   : > { %p5000_p8 = pneg %p4999_p6 }
  0x9c   : > { %p5007_p12 = pnand %p5006_p11, %p5000_p8 }
  0x9e   : > { %5010 = shalt.err (!%p5007_p12)
}
  0x9f   : > { %4579 = dma.hbm_to_vmem [thread:$0]  (!%p5233_p5), %s5913_s12, 32, %s535_s14, [#allocation8], %s5104_s22, %s5104_s22, %s5105_s11  }
  0xa0   : > { %s5011_s1 = scalar_lea.hbm %s5917_s16, 1024 }
  0xa1   : > { %p5012_p2 = scmp.ne.s32.totalorder %s5917_s16, %s5011_s1  ;;  %p5018_p0 = scmp.lt.u32.totalorder %s5011_s1, %s5917_s16 }
  0xa3   : > { %p5014_p3 = pnand %p5012_p2, %p5249_p7 }
  0xa5   : > { %p5015_p13 = pneg %p5014_p3 }
  0xa7   : > { %p5020_p1 = pnand %p5018_p0, %p5015_p13 }
  0xa9   : > { %5023 = shalt.err (!%p5020_p1)
}
  0xaa   : > { %s5024_s22 = scalar_lea.vmem %s5360_s21, 1024  ;;  %p5032_p9 = scmp.lt.s32.totalorder %s5360_s21, %s5360_s21 }
  0xab   : > { %p5025_p4 = scmp.ne.s32.totalorder %s5360_s21, %s5024_s22  ;;  %p5033_p10 = scmp.lt.s32.totalorder %s5024_s22, %s5024_s22 }
  0xad   : > { %p5027_p6 = pnand %p5025_p4, %p5249_p7  ;;  %p5034_p11 = por %p5033_p10, %p5032_p9 }
  0xaf   : > { %p5028_p8 = pneg %p5027_p6 }
  0xb1   : > { %p5035_p12 = pnand %p5034_p11, %p5028_p8 }
  0xb3   : > { %5038 = shalt.err (!%p5035_p12)
}
  0xb4   : > { %s5941_s11 = smov 4   ;;  %s5942_s14 = smov 64  }
  0xb5   : > { %4585 = dma.hbm_to_vmem [thread:$0]  (!%p5233_p5), %s5917_s16, 1024, %s5360_s21, [#allocation11], %s5942_s14, %s5942_s14, %s5941_s11  }
  0xb6   : > { %s5108_s18 = smov [#allocation13]   ;;  %s5039_s29 = scalar_lea.hbm %s5918_s17, 16 }
  0xb7   : > { %s578_s2 = sshll.u32 %s5108_s18, 4  ;;  %p5040_p2 = scmp.ne.s32.totalorder %s5918_s17, %s5039_s29  ;;  %s579_s2 = int_to_ptr.vmem [resolvable:$true] %s578_s2 }
  0xb8   : > { %p5046_p0 = scmp.lt.u32.totalorder %s5039_s29, %s5918_s17 }
  0xb9   : > { %p5042_p3 = pnand %p5040_p2, %p5249_p7 }
  0xbb   : > { %p5043_p13 = pneg %p5042_p3 }
  0xbd   : > { %p5048_p1 = pnand %p5046_p0, %p5043_p13 }
  0xbf   : > { %5051 = shalt.err (!%p5048_p1)
}
  0xc0   : > { %s5052_s21 = scalar_lea.vmem %s579_s2, 16  ;;  %s5059_s11 = scalar_lea.vmem %s579_s2, 32 }
  0xc1   : > { %p5053_p4 = scmp.ne.s32.totalorder %s579_s2, %s5052_s21  ;;  %p5060_p9 = scmp.lt.s32.totalorder %s579_s2, %s579_s2 }
  0xc2   : > { %p5061_p10 = scmp.lt.s32.totalorder %s5059_s11, %s5052_s21 }
  0xc3   : > { %p5055_p6 = pnand %p5053_p4, %p5249_p7 }
  0xc4   : > { %p5062_p11 = por %p5061_p10, %p5060_p9 }
  0xc5   : > { %p5056_p8 = pneg %p5055_p6 }
  0xc7   : > { %p5063_p12 = pnand %p5062_p11, %p5056_p8 }
  0xc9   : > { %5066 = shalt.err (!%p5063_p12)
}
  0xca   : > { %4588 = dma.hbm_to_vmem [thread:$0]  (!%p5233_p5), %s5918_s17, 16, %s579_s2, [#allocation14]  }
  0xcb   : > { %p5943_p2 = scmp.ne.s32.totalorder %s5937_s0, 0 }
  0xcc   : > { %p5944_p3 = scmp.eq.s32.totalorder (!%p5943_p2), %s5216_s30, 0 }
  0xcd   : > { %604 = sbr.rel (%p5943_p2) target bundleno = 5802 (0x16aa), region = 92 }
  0xd4   : > { %5072 = dma.done.wait (%p5944_p3), [#allocation3], 6144   ;;  %p5945_p7 = pmov %p5944_p3 }
  0xd5   : > { %p5946_p13 = pmov %p5944_p3 }
  0xd6   : > { %5074 = vsyncadd (%p5945_p7), [#allocation3], 4294961152 }
  0xd7   : > { %5076 = dma.done.wait (%p5946_p13), [#allocation5], 2080   ;;  %p5947_p0 = pmov %p5944_p3 }
  0xd9   : > { %5078 = vsyncadd (%p5947_p0), [#allocation5], 4294965216  ;;  %p5948_p1 = pmov %p5947_p0 }
  0xda   : > { %p5949_p5 = pmov %p5947_p0 }
  0xdb   : > { %5080 = dma.done.wait (%p5948_p1), [#allocation8], 4128  }
  0xdc   : > { %5082 = vsyncadd (%p5949_p5), [#allocation8], 4294963168  ;;  %p5950_p4 = pmov %p5947_p0 }
  0xdd   : > { %p5951_p6 = pmov %p5947_p0 }
  0xde   : > { %5084 = dma.done.wait (%p5950_p4), [#allocation11], 1040  }
  0xdf   : > { %5086 = vsyncadd (%p5951_p6), [#allocation11], 4294966256  ;;  %p5952_p8 = pmov %p5947_p0 }
  0xe0   : > { %p5953_p9 = pmov %p5947_p0 }
  0xe1   : > { %5088 = dma.done.wait (%p5952_p8), [#allocation14], 16  }
  0xe2   : > { %5090 = vsyncadd (%p5953_p9), [#allocation14], 4294967280  ;;  %v5109_v0 = vmov 0   ;;  %v4633_v1 = vld [vmem:[#allocation2 + $0x4] ss:$12 sps:$4 sm:$0xff]   ;;  %p686_p10 = scmp.lt.s32.totalorder %s5216_s30, 1  ;;  %v734_v19 = vlaneseq }
  0xe3   : > { %909 = vmatprep.mubr.bf16.mxu0 %v5109_v0  ;;  %v4635_v2 = vld [vmem:[#allocation2] ss:$12 sps:$4 sm:$0xff]   ;;  %877 = vmatprep.subr.bf16.mxu0 %v4633_v1  ;;  %v4636_v3 = vld [vmem:[#allocation2 + $0x1c] ss:$12 sps:$4 sm:$0xff]   ;;  %v4638_v4 = vld [vmem:[#allocation2 + $0x18] ss:$12 sps:$4 sm:$0xff]  }
  0xe4   : > { %878 = vmatpush1.bf16.msra.mxu0 %v4635_v2  ;;  %v4639_v5 = vld [vmem:[#allocation2 + $0x34] ss:$12 sps:$4 sm:$0xff]   ;;  %s5962_s30 = smov (!%p686_p10, %s5216_s30), 1  ;;  %v4641_v6 = vld [vmem:[#allocation2 + $0x30] ss:$12 sps:$4 sm:$0xff]   ;;  %s5954_s13 = sld [smem:[#allocation21_spill]] }
  0xe5   : > { %879 = vmatprep.subr.bf16.mxu0 %v4636_v3  ;;  %v4642_v7 = vld [vmem:[#allocation2 + $0x4c] ss:$12 sps:$4 sm:$0xff]   ;;  %v4644_v8 = vld [vmem:[#allocation2 + $0x48] ss:$12 sps:$4 sm:$0xff]   ;;  %s4044_s27 = sshll.u32 %s5962_s30, 3  ;;  %v5459_v20 = vshrl.u32 %v734_v19, 7 }
  0xe6   : > { %v4645_v9 = vld [vmem:[#allocation2 + $0x64] ss:$12 sps:$4 sm:$0xff]   ;;  %v4647_v10 = vld [vmem:[#allocation2 + $0x60] ss:$12 sps:$4 sm:$0xff]   ;;  %v4648_v11 = vld [vmem:[#allocation2 + $0x7c] ss:$12 sps:$4 sm:$0xff]  }
  0xe7   : > { %v4650_v12 = vld [vmem:[#allocation2 + $0x78] ss:$12 sps:$4 sm:$0xff]   ;;  %v4651_v13 = vld [vmem:[#allocation2 + $0x94] ss:$12 sps:$4 sm:$0xff]   ;;  %v4653_v14 = vld [vmem:[#allocation2 + $0x90] ss:$12 sps:$4 sm:$0xff]  }
  0xe8   : > { %880 = vmatpush1.bf16.msra.mxu0 %v4638_v4  ;;  %v4654_v15 = vld [vmem:[#allocation2 + $0xac] ss:$12 sps:$4 sm:$0xff]   ;;  %v4656_v16 = vld [vmem:[#allocation2 + $0xa8] ss:$12 sps:$4 sm:$0xff]   ;;  %v5462_v21 = vsub.s32 0, %v5459_v20  ;;  %v5470_v23 = vsub.s32 1, %v5459_v20 }
  0xe9   : > { %881 = vmatprep.subr.bf16.mxu0 %v4639_v5  ;;  %v5467_v22 = vld [vmem:[%s5904_s3] sm:$0x7]  ;;  %s5110_s1 = smov 64   ;;  %v5111_v34 = vmov 0.0   ;;  %vm5112_vm0 = vmmov 0   ;;  %vm1228_vm1 = vcmask 523264  }
  0xea   : > { %s689_s18 = scalar_lea.vmem %s5954_s13, %s4044_s27  ;;  %v737_v24 = vrot.slane %v5467_v22, %v5462_v21  ;;  %v741_v25 = vrot.slane %v5467_v22, %v5470_v23  ;;  %4372 = vmatprep.subr.bf16.mxu1 %v5111_v34  ;;  %4388 = vmatprep.mubr.msk.bf16.mxu1 %vm5112_vm0, %v5111_v34  ;;  %v4657_v35 = vld [vmem:[#allocation2 + $0x8] ss:$12 sps:$4 sm:$0xff]   ;;  %v4658_v36 = vld [vmem:[#allocation2 + $0x20] ss:$12 sps:$4 sm:$0xff]   ;;  %v4659_v37 = vld [vmem:[#allocation2 + $0x38] ss:$12 sps:$4 sm:$0xff]  }
  0xeb   : > { %v5455_v17 = vld [vmem:[%s689_s18] sm:$0xff]  ;;  %4373 = vmatpush3.bf16.msra.mxu1 %v4657_v35  ;;  %v4660_v38 = vld [vmem:[#allocation2 + $0x50] ss:$12 sps:$4 sm:$0xff]   ;;  %v4661_v39 = vld [vmem:[#allocation2 + $0x68] ss:$12 sps:$4 sm:$0xff]   ;;  %s5955_s25 = sld [smem:[#allocation22_spill]] }
  0xec   : > { %882 = vmatpush1.bf16.msra.mxu0 %v4641_v6  ;;  %v699_v18 = vpack.c.bf16 %v5455_v17, %v5455_v17  ;;  %4374 = vmatprep.subr.bf16.mxu1 %v5111_v34  ;;  %v4662_v40 = vld [vmem:[#allocation2 + $0x80] ss:$12 sps:$4 sm:$0xff]   ;;  %v4663_v41 = vld [vmem:[#allocation2 + $0x98] ss:$12 sps:$4 sm:$0xff]   ;;  %v4664_v42 = vld [vmem:[#allocation2 + $0xb0] ss:$12 sps:$4 sm:$0xff]  }
  0xed   : > { %883 = vmatprep.subr.bf16.mxu0 %v4642_v7  ;;  %v5113_v43 = vmov 1983009808   ;;  %v5114_v45 = vmov 1934713408   ;;  %vm1381_vm2 = vcmask 64512   ;;  %s5956_s13 = sld [smem:[#allocation24_spill]] }
  0xee   : > { %v973_v44 = vunpack.c.l.s4 %v5113_v43  ;;  %v1035_v46 = vunpack.c.l.s4 %v5114_v45  ;;  %s5957_s24 = sld [smem:[#allocation25_spill]]  ;;  %s5958_s2 = sld [smem:[#allocation26_spill]] }
  0xef   : > { %4375 = vmatpush3.bf16.msra.mxu1 %v4658_v36  ;;  %s5959_s22 = sld [smem:[#allocation27_spill]] }
  0xf0   : > { %884 = vmatpush1.bf16.msra.mxu0 %v4644_v8  ;;  %4376 = vmatprep.subr.bf16.mxu1 %v5111_v34  ;;  %v974_v47 = vunpack.c.0.s8 %v973_v44  ;;  %v1036_v49 = vunpack.c.0.s8 %v1035_v46 }
  0xf1   : > { %885 = vmatprep.subr.bf16.mxu0 %v4645_v9  ;;  %s692_s19 = scalar_lea.vmem %s5955_s25, %s5962_s30 }
  0xf2   : > { %v5493_v50 = vsub.s32 %v974_v47, %v5459_v20  ;;  %v5496_v54 = vsub.s32 %v1036_v49, %v5459_v20 }
  0xf3   : > { %4377 = vmatpush3.bf16.msra.mxu1 %v4659_v37 }
  0xf4   : > { %886 = vmatpush1.bf16.msra.mxu0 %v4647_v10  ;;  %4378 = vmatprep.subr.bf16.mxu1 %v5111_v34 }
  0xf5   : > { %887 = vmatprep.subr.bf16.mxu0 %v4648_v11  ;;  %s695_s21 = scalar_lea.vmem %s5959_s22, %s5962_s30 }
  0xf7   : > { %4379 = vmatpush3.bf16.msra.mxu1 %v4660_v38 }
  0xf8   : > { %888 = vmatpush1.bf16.msra.mxu0 %v4650_v12  ;;  %4380 = vmatprep.subr.bf16.mxu1 %v5111_v34 }
  0xf9   : > { %889 = vmatprep.subr.bf16.mxu0 %v4651_v13 }
  0xfb   : > { %4381 = vmatpush3.bf16.msra.mxu1 %v4661_v39 }
  0xfc   : > { %890 = vmatpush1.bf16.msra.mxu0 %v4653_v14  ;;  %4382 = vmatprep.subr.bf16.mxu1 %v5111_v34 }
  0xfd   : > { %891 = vmatprep.subr.bf16.mxu0 %v4654_v15 }
  0xff   : > { %4383 = vmatpush3.bf16.msra.mxu1 %v4662_v40 }
 0x100   : > { %892 = vmatpush1.bf16.msra.mxu0 %v4656_v16  ;;  %4384 = vmatprep.subr.bf16.mxu1 %v5111_v34 }
 0x101   : > { %4392 = vmatprep.subr.mxu0 %v5111_v34 }
 0x103   : > { %910 = vmatmul.mubr.bf16.vlgmr.msra.gmra.mrb[0].mxu0 %v699_v18  ;;  %4385 = vmatpush3.bf16.msra.mxu1 %v4663_v41 }
 0x104   : > { %4394 = vmatprep.mubr.msk.f32.mxu0 %vm5112_vm0, %v5111_v34  ;;  %4386 = vmatprep.subr.bf16.mxu1 %v5111_v34 }
 0x107   : > { %4387 = vmatpush3.bf16.msra.mxu1 %v4664_v42 }
 0x10a   : > { %4389 = vmatmul.mubr.bf16.vlgmr.msra.gmra.mrb[0].mxu1 %v699_v18 }
 0x10b   : > { %1953 = vmatprep.mubr.bf16.mxu1 %v5109_v0 }
 0x1d6   : > { %v911_v26 = vpop.f32.mrb[0].mxu0 }
 0x1d7   : > { %v912_v27 = vadd.f32 %v911_v26, %v737_v24  ;;  %v913_v28 = vpop.f32.mrb[1].mxu0 }
 0x1d8   : > { %v914_v29 = vadd.f32 %v913_v28, %v741_v25  ;;  %v915_v30 = vpop.f32.mrb[2].mxu0 }
 0x1d9   : > { %v916_v31 = vpop.f32.mrb[3].mxu0  ;;  %959 = vrot.lane.b32.xlu0 %v912_v27, %s5110_s1 }
 0x1da   : > { %v970_v32 = vcombine.low %v912_v27, %v914_v29  ;;  %v971_v33 = vcombine.high %v912_v27, %v914_v29 }
 0x1dc   : > { %v978_v55 = vrot.slane %v970_v32, %v5493_v50  ;;  %v985_v56 = vrot.slane %v971_v33, %v5493_v50 }
 0x1dd   : > { %963 = vrot.lane.b32.xlu0 %v914_v29, %s5110_s1  ;;  %v5528_v29 = vld [vmem:[%s692_s19] ss:$0 sm:$0xff]  ;;  %v952_v39 = vpop.f32.mrb[0].mxu1 }
 0x1de   : > { %v4390_v40 = vpop.f32.mrb[1].mxu1 }
 0x1df   : > { %v955_v41 = vpop.f32.mrb[2].mxu1  ;;  %v4669_v40 = vld [vmem:[#allocation4 + $0x20] sm:$0xff]  }
 0x1e0   : > { %v4391_v42 = vpop.f32.mrb[3].mxu1  ;;  %v4670_v41 = vld [vmem:[#allocation4 + $0x28] sm:$0xff]  }
 0x1e1   : > { %v4671_v42 = vld [vmem:[#allocation4 + $0x30] sm:$0xff]  }
 0x24b   : > { %v960_v48 = vpop.permute.xlu0 %959 }
 0x24f   : > { %v964_v51 = vpop.permute.xlu0 %963 }
 0x250   : > { %v986_v52 = vcombine.low %v960_v48, %v964_v51  ;;  %v987_v53 = vcombine.high %v960_v48, %v964_v51 }
 0x252   : > { %v994_v57 = vrot.slane %v986_v52, %v5493_v50  ;;  %v1001_v58 = vrot.slane %v987_v53, %v5493_v50 }
 0x254   : > { %v1032_v59 = vcombine.low %v978_v55, %v994_v57  ;;  %v1033_v60 = vcombine.high %v978_v55, %v994_v57  ;;  %v1048_v61 = vcombine.low %v985_v56, %v1001_v58  ;;  %v1049_v62 = vcombine.high %v985_v56, %v1001_v58 }
 0x255   : > { %v744_v55 = vsub.s32 2, %v5459_v20 }
 0x256   : > { %v1040_v63 = vrot.slane %v1032_v59, %v5496_v54  ;;  %v1047_v1 = vrot.slane %v1033_v60, %v5496_v54  ;;  %v1056_v2 = vrot.slane %v1048_v61, %v5496_v54  ;;  %v1063_v3 = vrot.slane %v1049_v62, %v5496_v54 }
 0x257   : > { %v745_v56 = vrot.slane %v5467_v22, %v744_v55 }
 0x258   : > { %v4069_v4 = vcombine.low %v1040_v63, %v1047_v1  ;;  %v4071_v5 = vcombine.high %v1040_v63, %v1047_v1  ;;  %v4073_v6 = vcombine.low %v1056_v2, %v1063_v3  ;;  %v4075_v7 = vcombine.high %v1056_v2, %v1063_v3 }
 0x259   : > { %v953_v57 = vadd.f32 %v952_v39, %v745_v56  ;;  %v4668_v39 = vld [vmem:[#allocation4 + $0x18] sm:$0xff]  }
 0x25a   : > { %v1112_v8 = vrot.slane %v4069_v4, %v5493_v50  ;;  %v1128_v9 = vrot.slane %v4071_v5, %v5493_v50  ;;  %v1144_v10 = vrot.slane %v4073_v6, %v5493_v50  ;;  %v1160_v11 = vrot.slane %v4075_v7, %v5493_v50 }
 0x25b   : > { %v1002_v59 = vcombine.high %v953_v57, %v5111_v34  ;;  %v1009_v61 = vrot.slane %v953_v57, %v5493_v50 }
 0x25c   : > { %v1168_v12 = vcombine.low %v1112_v8, %v1128_v9  ;;  %v1169_v13 = vcombine.high %v1112_v8, %v1128_v9  ;;  %v1192_v14 = vcombine.low %v1144_v10, %v1160_v11  ;;  %v1193_v15 = vcombine.high %v1144_v10, %v1160_v11 }
 0x25d   : > { %v1016_v2 = vrot.slane %v1002_v59, %v5493_v50 }
 0x25e   : > { %v1183_v16 = vrot.slane %v1169_v13, %v5496_v54  ;;  %v1207_v18 = vrot.slane %v1193_v15, %v5496_v54  ;;  %v1176_v19 = vrot.slane %v1168_v12, %v5496_v54  ;;  %v1200_v24 = vrot.slane %v1192_v14, %v5496_v54 }
 0x260   : > { %v1218_v25 = vcombine.low %v1183_v16, %v1207_v18  ;;  %v1216_v26 = vcombine.low %v1176_v19, %v1200_v24  ;;  %v1219_v27 = vcombine.high %v1183_v16, %v1207_v18  ;;  %v1217_v28 = vcombine.high %v1176_v19, %v1200_v24 }
 0x262   : > { %4393 = vmatpush3.xpose.msk.msra.mxu0 %vm1228_vm1, %v1218_v25 }
 0x263   : > { %4397 = vmatprep.subr.mxu0 %v5111_v34 }
 0x265   : > { %4395 = vmatmul.mubr.msk.f32.vlgmr.msra.gmra.mrb[4].mxu0 %vm1228_vm1, %v1216_v26 }
 0x266   : > { %4398 = vmatpush3.xpose.msk.msra.mxu0 %vm1228_vm1, %v1219_v27  ;;  %4399 = vmatprep.mubr.msk.f32.mxu0 %vm5112_vm0, %v5111_v34 }
 0x267   : > { %4402 = vmatprep.subr.mxu0 %v5111_v34 }
 0x269   : > { %4400 = vmatmul.mubr.msk.f32.vlgmr.msra.gmra.mrb[6].mxu0 %vm1228_vm1, %v1217_v28 }
 0x26a   : > { %4404 = vmatprep.mubr.msk.f32.mxu0 %vm5112_vm0, %v5111_v34 }
 0x338   : > { %v1301_v30 = vpop.f32.mrb[4].mxu0 }
 0x339   : > { %v1302_v31 = vadd.f32 %v5528_v29, %v1301_v30  ;;  %v4396_v32 = vpop.f32.mrb[5].mxu0 }
 0x33b   : > { %v1382_v33 = vsel %vm1381_vm2, %v1302_v31, -inf }
 0x33c   : > { %v1377_v35 = vpop.f32.mrb[6].mxu0  ;;  %1383 = vmax.xlane.f32.xlu1 %v1382_v33 }
 0x33d   : > { %v1378_v36 = vadd.f32 %v5528_v29, %v1377_v35  ;;  %v4401_v37 = vpop.f32.mrb[7].mxu0 }
 0x33e   : > { %v4666_v37 = vld [vmem:[#allocation4 + $0x8] sm:$0xff]  }
 0x33f   : > { %v1385_v38 = vsel %vm1381_vm2, %v1378_v36, -inf }
 0x340   : > { %1386 = vmax.xlane.f32.xlu1 %v1385_v38  ;;  %v4667_v38 = vld [vmem:[#allocation4 + $0x10] sm:$0xff]  }
 0x3c9   : > { %v1384_v43 = vpop.xlane.xlu1 %1383 }
 0x3ca   : > { %v1388_v44 = vsub.f32 %v1302_v31, %v1384_v43 }
 0x3cc   : > { %v1390_v45 = vmul.f32 1.442695, %v1388_v44 }
 0x3cd   : > { %v1387_v46 = vpop.xlane.xlu1 %1386 }
 0x3ce   : > { %4809 = vpow2.f32 %v1390_v45  ;;  %v1389_v47 = vsub.f32 %v1378_v36, %v1387_v46  ;;  %v4665_v36 = vld [vmem:[#allocation4] sm:$0xff]  }
 0x3d0   : > { %v1392_v48 = vmul.f32 1.442695, %v1389_v47 }
 0x3d2   : > { %4811 = vpow2.f32 %v1392_v48 }
 0x3d8   : > { %v4810_v49 = vpop.eup %4809 }
 0x3d9   : > { %v1394_v51 = vsel %vm1381_vm2, %v4810_v49, 0.0 }
 0x3da   : > { %1395 = vadd.xlane.f32.xlu0 %v1394_v51 }
 0x3dc   : > { %v4812_v52 = vpop.eup %4811 }
 0x3dd   : > { %v1397_v53 = vsel %vm1381_vm2, %v4812_v52, 0.0 }
 0x3de   : > { %1398 = vadd.xlane.f32.xlu1 %v1397_v53 }
 0x3ef   : > { %967 = vrot.lane.b32.xlu1 %v953_v57, %s5110_s1 }
 0x467   : > { %v1396_v62 = vpop.xlane.xlu0 %1395 }
 0x468   : > { %4813 = vrcp.f32 %v1396_v62 }
 0x46b   : > { %v1399_v58 = vpop.xlane.xlu1 %1398 }
 0x46c   : > { %4815 = vrcp.f32 %v1399_v58  ;;  %v4672_v58 = vld [vmem:[#allocation4 + $0x38] sm:$0xff]  }
 0x46f   : > { %v968_v60 = vpop.permute.xlu1 %967 }
 0x470   : > { %v1017_v63 = vcombine.high %v968_v60, %v5111_v34  ;;  %v1024_v1 = vrot.slane %v968_v60, %v5493_v50 }
 0x472   : > { %v1031_v3 = vrot.slane %v1017_v63, %v5493_v50  ;;  %v1064_v4 = vcombine.low %v1009_v61, %v1024_v1  ;;  %v1065_v22 = vcombine.high %v1009_v61, %v1024_v1  ;;  %v4814_v26 = vpop.eup %4813 }
 0x473   : > { %v1402_v32 = vmul.f32 %v4814_v26, %v4810_v49 }
 0x474   : > { %v1072_v5 = vrot.slane %v1064_v4, %v5496_v54  ;;  %v1079_v6 = vrot.slane %v1065_v22, %v5496_v54  ;;  %v1080_v7 = vcombine.low %v1016_v2, %v1031_v3  ;;  %v1081_v8 = vcombine.high %v1016_v2, %v1031_v3 }
 0x476   : > { %v1088_v9 = vrot.slane %v1080_v7, %v5496_v54  ;;  %v1095_v10 = vrot.slane %v1081_v8, %v5496_v54  ;;  %v4070_v11 = vcombine.low %v1072_v5, %v1079_v6  ;;  %v4072_v12 = vcombine.high %v1072_v5, %v1079_v6  ;;  %v4816_v31 = vpop.eup %4815 }
 0x477   : > { %v1403_v35 = vmul.f32 %v4816_v31, %v4812_v52  ;;  %v4673_v31 = vld [vmem:[%s5909_s8] ss:$8 sps:$4 sm:$0xff]  }
 0x478   : > { %v1119_v13 = vrot.slane %v4070_v11, %v5493_v50  ;;  %v1135_v14 = vrot.slane %v4072_v12, %v5493_v50  ;;  %v4074_v15 = vcombine.low %v1088_v9, %v1095_v10  ;;  %v4076_v16 = vcombine.high %v1088_v9, %v1095_v10 }
 0x47a   : > { %v1151_v18 = vrot.slane %v4074_v15, %v5493_v50  ;;  %v1167_v19 = vrot.slane %v4076_v16, %v5493_v50  ;;  %v1184_v24 = vcombine.low %v1119_v13, %v1135_v14 }
 0x47c   : > { %v1208_v25 = vcombine.low %v1151_v18, %v1167_v19  ;;  %v1191_v27 = vrot.slane %v1184_v24, %v5496_v54  ;;  %v4086_v19 = vld [vmem:[%s5906_s5] ss:$0 sm:$0xff] }
 0x47e   : > { %v1215_v28 = vrot.slane %v1208_v25, %v5496_v54 }
 0x480   : > { %v1220_v30 = vcombine.low %v1191_v27, %v1215_v28  ;;  %v1221_v33 = vcombine.high %v1191_v27, %v1215_v28 }
 0x482   : > { %4403 = vmatpush3.msra.mxu0 %v1220_v30 }
 0x483   : > { %4405 = vmatmul.mubr.msk.f32.vlgmr.msra.gmra.mrb[8].mxu0 %vm1381_vm2, %v1402_v32  ;;  %4407 = vmatprep.subr.mxu0 %v5111_v34  ;;  %v4675_v32 = vld [vmem:[%s5909_s8 + $0x4] ss:$8 sps:$4 sm:$0xff]  }
 0x484   : > { %4408 = vmatpush3.msra.mxu0 %v1221_v33  ;;  %4409 = vmatprep.mubr.msk.f32.mxu0 %vm5112_vm0, %v5111_v34  ;;  %v4678_v33 = vld [vmem:[%s5909_s8 + $0x14] ss:$8 sps:$4 sm:$0xff]  }
 0x485   : > { %4412 = vmatprep.subr.bf16.mxu0 %v5111_v34  ;;  %1921 = vmatprep.subr.bf16.mxu1 %v4675_v32 }
 0x486   : > { %1922 = vmatpush1.bf16.msra.mxu1 %v4673_v31 }
 0x487   : > { %4410 = vmatmul.mubr.msk.f32.vlgmr.msra.gmra.mrb[10].mxu0 %vm1381_vm2, %v1403_v35  ;;  %v4676_v35 = vld [vmem:[%s5909_s8 + $0x10] ss:$8 sps:$4 sm:$0xff]   ;;  %1923 = vmatprep.subr.bf16.mxu1 %v4678_v33 }
 0x488   : > { %4428 = vmatprep.mubr.msk.bf16.mxu0 %vm5112_vm0, %v5111_v34  ;;  %4413 = vmatpush3.bf16.msra.mxu0 %v4665_v36  ;;  %v4679_v36 = vld [vmem:[%s5909_s8 + $0x20] ss:$8 sps:$4 sm:$0xff]  }
 0x489   : > { %4414 = vmatprep.subr.bf16.mxu0 %v5111_v34 }
 0x48a   : > { %1924 = vmatpush1.bf16.msra.mxu1 %v4676_v35 }
 0x48c   : > { %4415 = vmatpush3.bf16.msra.mxu0 %v4666_v37 }
 0x48d   : > { %4416 = vmatprep.subr.bf16.mxu0 %v5111_v34 }
 0x490   : > { %4417 = vmatpush3.bf16.msra.mxu0 %v4667_v38 }
 0x491   : > { %4418 = vmatprep.subr.bf16.mxu0 %v5111_v34 }
 0x494   : > { %4419 = vmatpush3.bf16.msra.mxu0 %v4668_v39 }
 0x495   : > { %4420 = vmatprep.subr.bf16.mxu0 %v5111_v34 }
 0x498   : > { %4421 = vmatpush3.bf16.msra.mxu0 %v4669_v40 }
 0x499   : > { %4422 = vmatprep.subr.bf16.mxu0 %v5111_v34 }
 0x49c   : > { %4423 = vmatpush3.bf16.msra.mxu0 %v4670_v41  ;;  %v4684_v41 = vld [vmem:[%s5909_s8 + $0x34] ss:$8 sps:$4 sm:$0xff]  }
 0x49d   : > { %4424 = vmatprep.subr.bf16.mxu0 %v5111_v34 }
 0x4a0   : > { %4425 = vmatpush3.bf16.msra.mxu0 %v4671_v42  ;;  %v4682_v42 = vld [vmem:[%s5909_s8 + $0x30] ss:$8 sps:$4 sm:$0xff]  }
 0x4a1   : > { %4426 = vmatprep.subr.bf16.mxu0 %v5111_v34 }
 0x4a4   : > { %4427 = vmatpush3.bf16.msra.mxu0 %v4672_v58  ;;  %v4095_v58 = vld [vmem:[#allocation6] ss:$0 sm:$0xff] }
 0x556   : > { %v1473_v43 = vpop.f32.mrb[8].mxu0 }
 0x557   : > { %v4406_v44 = vpop.f32.mrb[9].mxu0  ;;  %v1550_v45 = vcombine.high %v1473_v43, %v5111_v34  ;;  %v1557_v47 = vrot.slane %v1473_v43, %v5493_v50  ;;  %v4687_v43 = vld [vmem:[%s5909_s8 + $0x44] ss:$8 sps:$4 sm:$0xff]  }
 0x558   : > { %v4685_v44 = vld [vmem:[%s5909_s8 + $0x40] ss:$8 sps:$4 sm:$0xff]  }
 0x559   : > { %v1564_v52 = vrot.slane %v1550_v45, %v5493_v50  ;;  %v4690_v45 = vld [vmem:[%s5909_s8 + $0x54] ss:$8 sps:$4 sm:$0xff]  }
 0x55a   : > { %v1546_v46 = vpop.f32.mrb[10].mxu0 }
 0x55b   : > { %v1565_v48 = vcombine.high %v1546_v46, %v5111_v34  ;;  %v1572_v49 = vrot.slane %v1546_v46, %v5493_v50  ;;  %v4411_v51 = vpop.f32.mrb[11].mxu0  ;;  %v4688_v46 = vld [vmem:[%s5909_s8 + $0x50] ss:$8 sps:$4 sm:$0xff]  }
 0x55c   : > { %v4694_v51 = vld [vmem:[%s5909_s8 + $0x70] ss:$8 sps:$4 sm:$0xff]  }
 0x55d   : > { %v1579_v53 = vrot.slane %v1565_v48, %v5493_v50  ;;  %v1580_v56 = vcombine.low %v1557_v47, %v1572_v49  ;;  %v1581_v57 = vcombine.high %v1557_v47, %v1572_v49  ;;  %v4693_v47 = vld [vmem:[%s5909_s8 + $0x64] ss:$8 sps:$4 sm:$0xff]   ;;  %v4691_v48 = vld [vmem:[%s5909_s8 + $0x60] ss:$8 sps:$4 sm:$0xff]   ;;  %v4696_v49 = vld [vmem:[%s5909_s8 + $0x74] ss:$8 sps:$4 sm:$0xff]  }
 0x55f   : > { %v1588_v59 = vrot.slane %v1580_v56, %v5496_v54  ;;  %v1595_v60 = vrot.slane %v1581_v57, %v5496_v54  ;;  %v1596_v61 = vcombine.low %v1564_v52, %v1579_v53  ;;  %v1597_v62 = vcombine.high %v1564_v52, %v1579_v53 }
 0x561   : > { %v1604_v63 = vrot.slane %v1596_v61, %v5496_v54  ;;  %v1611_v1 = vrot.slane %v1597_v62, %v5496_v54  ;;  %v1616_v2 = vcombine.low %v1588_v59, %v1595_v60  ;;  %v4084_v3 = vcombine.high %v1588_v59, %v1595_v60  ;;  %v4096_v60 = vld [vmem:[%s5908_s7] ss:$0 sm:$0xff] }
 0x563   : > { %v1623_v4 = vrot.slane %v1616_v2, %v5493_v50  ;;  %v1631_v22 = vrot.slane %v4084_v3, %v5493_v50  ;;  %v1632_v5 = vcombine.low %v1604_v63, %v1611_v1  ;;  %v4085_v6 = vcombine.high %v1604_v63, %v1611_v1  ;;  %v4697_v1 = vld [vmem:[#allocation7 + $0x40] sm:$0xff]   ;;  %v4699_v3 = vld [vmem:[#allocation7 + $0x48] sm:$0xff]  }
 0x564   : > { %v4698_v2 = vld [vmem:[#allocation7] sm:$0xff]   ;;  %4284 = vmatprep.subr.bf16.mxu0 %v4697_v1 }
 0x565   : > { %v1639_v7 = vrot.slane %v1632_v5, %v5493_v50  ;;  %v1647_v8 = vrot.slane %v4085_v6, %v5493_v50  ;;  %v1648_v9 = vcombine.low %v1623_v4, %v1631_v22  ;;  %v4700_v4 = vld [vmem:[#allocation7 + $0x8] sm:$0xff]   ;;  %v4701_v22 = vld [vmem:[#allocation7 + $0x50] sm:$0xff]   ;;  %v4703_v6 = vld [vmem:[#allocation7 + $0x58] sm:$0xff]  }
 0x566   : > { %v4702_v5 = vld [vmem:[#allocation7 + $0x10] sm:$0xff]  }
 0x567   : > { %v1656_v10 = vcombine.low %v1639_v7, %v1647_v8  ;;  %v1655_v11 = vrot.slane %v1648_v9, %v5496_v54  ;;  %v4704_v7 = vld [vmem:[#allocation7 + $0x18] sm:$0xff]   ;;  %v4705_v8 = vld [vmem:[#allocation7 + $0x60] sm:$0xff]  }
 0x568   : > { %v4706_v9 = vld [vmem:[#allocation7 + $0x20] sm:$0xff]  }
 0x569   : > { %v1663_v12 = vrot.slane %v1656_v10, %v5496_v54  ;;  %v4707_v10 = vld [vmem:[#allocation7 + $0x68] sm:$0xff]  }
 0x56a   : > { %v4715_v1 = vld [vmem:[#allocation2 + $0xc4] ss:$12 sps:$4 sm:$0xff]  }
 0x56b   : > { %v1665_v13 = vcombine.high %v1655_v11, %v1663_v12  ;;  %v1664_v14 = vcombine.low %v1655_v11, %v1663_v12  ;;  %v4708_v11 = vld [vmem:[#allocation7 + $0x28] sm:$0xff]   ;;  %v4709_v12 = vld [vmem:[#allocation7 + $0x70] sm:$0xff]  }
 0x56d   : > { %1667 = vrot.lane.b32.xlu1 %v1665_v13, %s5110_s1  ;;  %v4710_v13 = vld [vmem:[#allocation7 + $0x30] sm:$0xff]  }
 0x5df   : > { %v1668_v15 = vpop.permute.xlu1 %1667 }
 0x5e0   : > { %v1670_v16 = vsel %vm1228_vm1, %v1664_v14, %v1668_v15  ;;  %v4711_v14 = vld [vmem:[#allocation7 + $0x78] sm:$0xff]  }
 0x5e1   : > { %v1671_v18 = vpack.c.bf16 %v1670_v16, %v1670_v16  ;;  %v4712_v15 = vld [vmem:[#allocation7 + $0x38] sm:$0xff]  }
 0x5e2   : > { %v1829_v16 = vld [vmem:[%s5910_s9] sm:$0x3] }
 0x5e3   : > { %4429 = vmatmul.mubr.bf16.vlgmr.msra.gmra.mrb[12].mxu0 %v1671_v18  ;;  %v1834_v18 = vrot.slane %v1829_v16, %v5462_v21 }
 0x5e4   : > { %4285 = vmatpush3.bf16.msra.mxu0 %v4698_v2  ;;  %v4716_v2 = vld [vmem:[#allocation2 + $0xc8] ss:$12 sps:$4 sm:$0xff]  }
 0x5e5   : > { %4286 = vmatprep.subr.bf16.mxu0 %v4699_v3  ;;  %v4719_v3 = vld [vmem:[#allocation2 + $0xdc] ss:$12 sps:$4 sm:$0xff]  }
 0x5e8   : > { %4287 = vmatpush3.bf16.msra.mxu0 %v4700_v4  ;;  %v4720_v4 = vld [vmem:[#allocation2 + $0xe0] ss:$12 sps:$4 sm:$0xff]  }
 0x5e9   : > { %4288 = vmatprep.subr.bf16.mxu0 %v4701_v22  ;;  %v4717_v22 = vld [vmem:[#allocation2 + $0xd8] ss:$12 sps:$4 sm:$0xff]  }
 0x5ec   : > { %4289 = vmatpush3.bf16.msra.mxu0 %v4702_v5  ;;  %v4723_v5 = vld [vmem:[#allocation2 + $0xf4] ss:$12 sps:$4 sm:$0xff]  }
 0x5ed   : > { %4290 = vmatprep.subr.bf16.mxu0 %v4703_v6  ;;  %v4721_v6 = vld [vmem:[#allocation2 + $0xf0] ss:$12 sps:$4 sm:$0xff]  }
 0x5f0   : > { %4291 = vmatpush3.bf16.msra.mxu0 %v4704_v7 }
 0x5f1   : > { %4292 = vmatprep.subr.bf16.mxu0 %v4705_v8 }
 0x5f4   : > { %4293 = vmatpush3.bf16.msra.mxu0 %v4706_v9 }
 0x5f5   : > { %4294 = vmatprep.subr.bf16.mxu0 %v4707_v10  ;;  %v4724_v10 = vld [vmem:[#allocation2 + $0xf8] ss:$12 sps:$4 sm:$0xff]  }
 0x5f8   : > { %4295 = vmatpush3.bf16.msra.mxu0 %v4708_v11  ;;  %v4727_v11 = vld [vmem:[#allocation2 + $0x10c] ss:$12 sps:$4 sm:$0xff]  }
 0x5f9   : > { %4296 = vmatprep.subr.bf16.mxu0 %v4709_v12  ;;  %v4725_v12 = vld [vmem:[#allocation2 + $0x108] ss:$12 sps:$4 sm:$0xff]  }
 0x5fc   : > { %4297 = vmatpush3.bf16.msra.mxu0 %v4710_v13  ;;  %v4728_v13 = vld [vmem:[#allocation2 + $0x110] ss:$12 sps:$4 sm:$0xff]  }
 0x5fd   : > { %4298 = vmatprep.subr.bf16.mxu0 %v4711_v14  ;;  %v4731_v14 = vld [vmem:[#allocation2 + $0x124] ss:$12 sps:$4 sm:$0xff]  }
 0x600   : > { %4299 = vmatpush3.bf16.msra.mxu0 %v4712_v15  ;;  %v4729_v15 = vld [vmem:[#allocation2 + $0x120] ss:$12 sps:$4 sm:$0xff]  }
 0x601   : > { %4432 = vmatprep.subr.bf16.mxu0 %v5111_v34 }
 0x6b6   : > { %v1777_v24 = vpop.f32.mrb[12].mxu0 }
 0x6b7   : > { %v1778_v25 = vadd.f32 %v4086_v19, %v1777_v24  ;;  %v4430_v26 = vpop.f32.mrb[13].mxu0  ;;  %v1838_v19 = vrot.slane %v1829_v16, %v5470_v23  ;;  %v4732_v16 = vld [vmem:[#allocation2 + $0x128] ss:$12 sps:$4 sm:$0xff]  }
 0x6b8   : > { %v1780_v27 = vpop.f32.mrb[14].mxu0 }
 0x6b9   : > { %v4431_v28 = vpop.f32.mrb[15].mxu0  ;;  %v1783_v30 = vadd.f32 %v1778_v25, %v5455_v17  ;;  %v4681_v17 = vld [vmem:[%s5909_s8 + $0x24] ss:$8 sps:$4 sm:$0xff]  }
 0x6ba   : > { %1925 = vmatprep.subr.bf16.mxu1 %v4681_v17 }
 0x6bb   : > { %1786 = vadd.xlane.f32.xlu1 %v1783_v30  ;;  %1926 = vmatpush1.bf16.msra.mxu1 %v4679_v36 }
 0x6bc   : > { %1927 = vmatprep.subr.bf16.mxu1 %v4684_v41 }
 0x6bf   : > { %1928 = vmatpush1.bf16.msra.mxu1 %v4682_v42 }
 0x6c0   : > { %1929 = vmatprep.subr.bf16.mxu1 %v4687_v43 }
 0x6c3   : > { %1930 = vmatpush1.bf16.msra.mxu1 %v4685_v44 }
 0x6c4   : > { %1931 = vmatprep.subr.bf16.mxu1 %v4690_v45 }
 0x6c7   : > { %1932 = vmatpush1.bf16.msra.mxu1 %v4688_v46 }
 0x6c8   : > { %1933 = vmatprep.subr.bf16.mxu1 %v4693_v47 }
 0x6cb   : > { %1934 = vmatpush1.bf16.msra.mxu1 %v4691_v48 }
 0x6cc   : > { %1935 = vmatprep.subr.bf16.mxu1 %v4696_v49 }
 0x6cf   : > { %1936 = vmatpush1.bf16.msra.mxu1 %v4694_v51 }
 0x6d0   : > { %2365 = vmatprep.subr.bf16.mxu1 %v4715_v1 }
 0x748   : > { %v1787_v37 = vpop.xlane.xlu1 %1786 }
 0x749   : > { %v1789_v38 = vmul.f32 0.0078125, %v1787_v37 }
 0x74b   : > { %v1790_v39 = vsub.f32 %v1783_v30, %v1789_v38 }
 0x74d   : > { %v1791_v40 = vmul.f32 %v1790_v39, %v1790_v39 }
 0x74f   : > { %1792 = vadd.xlane.f32.xlu0 %v1791_v40 }
 0x7dc   : > { %v1793_v52 = vpop.xlane.xlu0 %1792 }
 0x7dd   : > { %v1794_v53 = vmul.f32 0.0078125, %v1793_v52 }
 0x7df   : > { %v1795_v56 = vadd.f32 1e-12, %v1794_v53  ;;  %v4113_v53 = vld [vmem:[%s5956_s13] ss:$0 sm:$0xff] }
 0x7e1   : > { %4817 = vrsqrt.f32 %v1795_v56 }
 0x7eb   : > { %v4818_v57 = vpop.eup %4817 }
 0x7ec   : > { %v1797_v59 = vmul.f32 %v4818_v57, %v1790_v39 }
 0x7ee   : > { %v1804_v61 = vmul.f32 %v4095_v58, %v1797_v59 }
 0x7f0   : > { %v5645_v62 = vadd.f32 %v4096_v60, %v1804_v61 }
 0x7f2   : > { %v1812_v63 = vpack.c.bf16 %v5645_v62, %v5645_v62 }
 0x7f4   : > { %1954 = vmatmul.mubr.bf16.vlgmr.msra.gmra.mrb[4].mxu1 %v1812_v63  ;;  %v4713_v63 = vld [vmem:[#allocation2 + $0xc0] ss:$12 sps:$4 sm:$0xff]  }
 0x7f5   : > { %2397 = vmatprep.mubr.bf16.mxu1 %v5109_v0  ;;  %2366 = vmatpush1.bf16.msra.mxu1 %v4713_v63 }
 0x7f6   : > { %2367 = vmatprep.subr.bf16.mxu1 %v4719_v3 }
 0x7f9   : > { %2368 = vmatpush1.bf16.msra.mxu1 %v4717_v22 }
 0x7fa   : > { %2369 = vmatprep.subr.bf16.mxu1 %v4723_v5 }
 0x7fd   : > { %2370 = vmatpush1.bf16.msra.mxu1 %v4721_v6 }
 0x7fe   : > { %2371 = vmatprep.subr.bf16.mxu1 %v4727_v11 }
 0x801   : > { %2372 = vmatpush1.bf16.msra.mxu1 %v4725_v12 }
 0x802   : > { %2373 = vmatprep.subr.bf16.mxu1 %v4731_v14 }
 0x805   : > { %2374 = vmatpush1.bf16.msra.mxu1 %v4729_v15 }
 0x8c7   : > { %v1955_v24 = vpop.f32.mrb[4].mxu1 }
 0x8c8   : > { %v1956_v25 = vadd.f32 %v1955_v24, %v1834_v18  ;;  %v1957_v26 = vpop.f32.mrb[5].mxu1  ;;  %v4735_v18 = vld [vmem:[#allocation2 + $0x13c] ss:$12 sps:$4 sm:$0xff]   ;;  %v4736_v24 = vld [vmem:[#allocation2 + $0x140] ss:$12 sps:$4 sm:$0xff]  }
 0x8c9   : > { %v1958_v27 = vadd.f32 %v1957_v26, %v1838_v19  ;;  %v1959_v28 = vpop.f32.mrb[6].mxu1  ;;  %v4733_v19 = vld [vmem:[#allocation2 + $0x138] ss:$12 sps:$4 sm:$0xff]   ;;  %2375 = vmatprep.subr.bf16.mxu1 %v4735_v18  ;;  %v4737_v26 = vld [vmem:[#allocation2 + $0x150] ss:$12 sps:$4 sm:$0xff]  }
 0x8ca   : > { %v1964_v30 = vmul.f32 0.044715, %v1956_v25  ;;  %v1960_v31 = vpop.f32.mrb[7].mxu1  ;;  %v1962_v43 = vmul.f32 0.5, %v1956_v25  ;;  %2376 = vmatpush1.bf16.msra.mxu1 %v4733_v19  ;;  %v4743_v28 = vld [vmem:[#allocation2 + $0x16c] ss:$12 sps:$4 sm:$0xff]  }
 0x8cb   : > { %v1965_v32 = vmul.f32 0.044715, %v1958_v27  ;;  %v1963_v45 = vmul.f32 0.5, %v1958_v27  ;;  %v4744_v31 = vld [vmem:[#allocation2 + $0x170] ss:$12 sps:$4 sm:$0xff]  }
 0x8cc   : > { %v1966_v33 = vmul.f32 %v1964_v30, %v1956_v25  ;;  %v4741_v30 = vld [vmem:[#allocation2 + $0x168] ss:$12 sps:$4 sm:$0xff]  }
 0x8cd   : > { %v1967_v35 = vmul.f32 %v1965_v32, %v1958_v27 }
 0x8ce   : > { %v1968_v17 = vmul.f32 %v1966_v33, %v1956_v25 }
 0x8cf   : > { %v1969_v36 = vmul.f32 %v1967_v35, %v1958_v27 }
 0x8d0   : > { %v1970_v37 = vadd.f32 %v1968_v17, %v1956_v25  ;;  %v4739_v25 = vld [vmem:[#allocation2 + $0x154] ss:$12 sps:$4 sm:$0xff]  }
 0x8d1   : > { %v1971_v38 = vadd.f32 %v1969_v36, %v1958_v27  ;;  %v4740_v27 = vld [vmem:[#allocation2 + $0x158] ss:$12 sps:$4 sm:$0xff]   ;;  %2377 = vmatprep.subr.bf16.mxu1 %v4739_v25  ;;  %v4130_v36 = vld [vmem:[#allocation9] ss:$0 sm:$0xff] }
 0x8d2   : > { %v1972_v39 = vmul.f32 0.7978846, %v1970_v37  ;;  %2378 = vmatpush1.bf16.msra.mxu1 %v4737_v26 }
 0x8d3   : > { %v1973_v40 = vmul.f32 0.7978846, %v1971_v38  ;;  %2379 = vmatprep.subr.bf16.mxu1 %v4743_v28  ;;  %v4131_v38 = vld [vmem:[%s5957_s24] ss:$0 sm:$0xff] }
 0x8d4   : > { %4819 = vtanh.f32 %v1972_v39 }
 0x8d5   : > { %4821 = vtanh.f32 %v1973_v40 }
 0x8d6   : > { %2380 = vmatpush1.bf16.msra.mxu1 %v4741_v30 }
 0x8d7   : > { %4452 = vmatprep.subr.mxu1 %v5111_v34 }
 0x8de   : > { %v4820_v41 = vpop.eup %4819 }
 0x8df   : > { %v4822_v42 = vpop.eup %4821  ;;  %v1976_v44 = vadd.f32 1.0, %v4820_v41 }
 0x8e0   : > { %v1977_v46 = vadd.f32 1.0, %v4822_v42  ;;  %v5683_v42 = vld [vmem:[%s5904_s3 + $0x3] sm:$0x7] }
 0x8e1   : > { %v1978_v47 = vmul.f32 %v1976_v44, %v1962_v43  ;;  %v2225_v43 = vrot.slane %v5683_v42, %v5462_v21  ;;  %v2229_v44 = vrot.slane %v5683_v42, %v5470_v23 }
 0x8e2   : > { %v1979_v48 = vmul.f32 %v1977_v46, %v1963_v45 }
 0x8e3   : > { %v1980_v51 = vpack.c.bf16 %v1978_v47, %v1978_v47 }
 0x8e4   : > { %v1981_v49 = vpack.c.bf16 %v1979_v48, %v1979_v48 }
 0x8e6   : > { %2149 = vmatprep.mubr.bf16.mxu0 %v1981_v49 }
 0x8e7   : > { %2150 = vmatmul.mubr.bf16.vlgmr.msra.gmra.mrb[16].mxu0 %v1980_v51 }
 0x8e8   : > { %4448 = vmatprep.mubr.msk.bf16.mxu0 %vm5112_vm0, %v5111_v34  ;;  %4433 = vmatpush3.bf16.msra.mxu0 %v4716_v2 }
 0x8e9   : > { %4434 = vmatprep.subr.bf16.mxu0 %v5111_v34 }
 0x8ec   : > { %4435 = vmatpush3.bf16.msra.mxu0 %v4720_v4 }
 0x8ed   : > { %4436 = vmatprep.subr.bf16.mxu0 %v5111_v34 }
 0x8f0   : > { %4437 = vmatpush3.bf16.msra.mxu0 %v4724_v10 }
 0x8f1   : > { %4438 = vmatprep.subr.bf16.mxu0 %v5111_v34 }
 0x8f4   : > { %4439 = vmatpush3.bf16.msra.mxu0 %v4728_v13 }
 0x8f5   : > { %4440 = vmatprep.subr.bf16.mxu0 %v5111_v34 }
 0x8f8   : > { %4441 = vmatpush3.bf16.msra.mxu0 %v4732_v16 }
 0x8f9   : > { %4442 = vmatprep.subr.bf16.mxu0 %v5111_v34 }
 0x8fc   : > { %4443 = vmatpush3.bf16.msra.mxu0 %v4736_v24 }
 0x8fd   : > { %4444 = vmatprep.subr.bf16.mxu0 %v5111_v34 }
 0x900   : > { %4445 = vmatpush3.bf16.msra.mxu0 %v4740_v27 }
 0x901   : > { %4446 = vmatprep.subr.bf16.mxu0 %v5111_v34 }
 0x904   : > { %4447 = vmatpush3.bf16.msra.mxu0 %v4744_v31 }
 0x9ba   : > { %v4300_v52 = vpop.f32.mrb[16].mxu0 }
 0x9bb   : > { %v4301_v56 = vpop.f32.mrb[17].mxu0 }
 0x9bc   : > { %v4302_v57 = vadd.f32 %v4301_v56, %v4300_v52  ;;  %v4303_v58 = vpop.f32.mrb[18].mxu0 }
 0x9bd   : > { %v4304_v59 = vpop.f32.mrb[19].mxu0 }
 0x9be   : > { %v2152_v60 = vadd.f32 %v4302_v57, %v4113_v53 }
 0x9c0   : > { %v2157_v61 = vadd.f32 %v2152_v60, %v5645_v62 }
 0x9c2   : > { %2160 = vadd.xlane.f32.xlu0 %v2157_v61 }
 0xa4f   : > { %v2161_v62 = vpop.xlane.xlu0 %2160 }
 0xa50   : > { %v2162_v7 = vmul.f32 0.0078125, %v2161_v62 }
 0xa52   : > { %v2163_v8 = vsub.f32 %v2157_v61, %v2162_v7 }
 0xa54   : > { %v2164_v9 = vmul.f32 %v2163_v8, %v2163_v8 }
 0xa56   : > { %2165 = vadd.xlane.f32.xlu0 %v2164_v9 }
 0xae3   : > { %v2166_v32 = vpop.xlane.xlu0 %2165 }
 0xae4   : > { %v2167_v33 = vmul.f32 0.0078125, %v2166_v32 }
 0xae6   : > { %v2168_v35 = vadd.f32 1e-12, %v2167_v33 }
 0xae8   : > { %4823 = vrsqrt.f32 %v2168_v35 }
 0xaf2   : > { %v4824_v17 = vpop.eup %4823 }
 0xaf3   : > { %v2170_v37 = vmul.f32 %v4824_v17, %v2163_v8 }
 0xaf5   : > { %v2177_v39 = vmul.f32 %v4130_v36, %v2170_v37 }
 0xaf7   : > { %v5673_v40 = vadd.f32 %v4131_v38, %v2177_v39 }
 0xaf9   : > { %v2185_v41 = vpack.c.bf16 %v5673_v40, %v5673_v40 }
 0xafb   : > { %2398 = vmatmul.mubr.bf16.vlgmr.msra.gmra.mrb[8].mxu1 %v2185_v41  ;;  %4449 = vmatmul.mubr.bf16.vlgmr.msra.gmra.mrb[20].mxu0 %v2185_v41 }
 0xafc   : > { %4454 = vmatprep.mubr.msk.f32.mxu1 %vm5112_vm0, %v5111_v34  ;;  %3438 = vmatprep.mubr.bf16.mxu0 %v5109_v0 }
 0xbce   : > { %v2399_v45 = vpop.f32.mrb[8].mxu1  ;;  %v5689_v46 = vpop.f32.mrb[20].mxu0 }
 0xbcf   : > { %v2400_v47 = vadd.f32 %v2399_v45, %v2225_v43  ;;  %v2401_v48 = vpop.f32.mrb[9].mxu1  ;;  %v4450_v49 = vpop.f32.mrb[21].mxu0 }
 0xbd0   : > { %v2402_v51 = vadd.f32 %v2401_v48, %v2229_v44  ;;  %v2403_v52 = vpop.f32.mrb[10].mxu1  ;;  %v2443_v0 = vpop.f32.mrb[22].mxu0 }
 0xbd1   : > { %v2404_v53 = vpop.f32.mrb[11].mxu1  ;;  %v4451_v56 = vpop.f32.mrb[23].mxu0  ;;  %2447 = vrot.lane.b32.xlu0 %v2400_v47, %s5110_s1 }
 0xbd2   : > { %v2458_v57 = vcombine.low %v2400_v47, %v2402_v51  ;;  %v2459_v58 = vcombine.high %v2400_v47, %v2402_v51  ;;  %2451 = vrot.lane.b32.xlu1 %v2402_v51, %s5110_s1 }
 0xbd4   : > { %v2466_v1 = vrot.slane %v2458_v57, %v5493_v50  ;;  %v2473_v2 = vrot.slane %v2459_v58, %v5493_v50 }
 0xc43   : > { %v2448_v59 = vpop.permute.xlu0 %2447 }
 0xc44   : > { %v2452_v60 = vpop.permute.xlu1 %2451 }
 0xc45   : > { %v2474_v61 = vcombine.low %v2448_v59, %v2452_v60  ;;  %v2475_v63 = vcombine.high %v2448_v59, %v2452_v60 }
 0xc47   : > { %v2482_v3 = vrot.slane %v2474_v61, %v5493_v50  ;;  %v2489_v4 = vrot.slane %v2475_v63, %v5493_v50 }
 0xc49   : > { %v2520_v22 = vcombine.low %v2466_v1, %v2482_v3  ;;  %v2521_v5 = vcombine.high %v2466_v1, %v2482_v3  ;;  %v2536_v6 = vcombine.low %v2473_v2, %v2489_v4  ;;  %v2537_v62 = vcombine.high %v2473_v2, %v2489_v4 }
 0xc4b   : > { %v2528_v7 = vrot.slane %v2520_v22, %v5496_v54  ;;  %v2535_v8 = vrot.slane %v2521_v5, %v5496_v54  ;;  %v2544_v9 = vrot.slane %v2536_v6, %v5496_v54  ;;  %v2551_v10 = vrot.slane %v2537_v62, %v5496_v54 }
 0xc4d   : > { %v4157_v11 = vcombine.low %v2528_v7, %v2535_v8  ;;  %v4159_v12 = vcombine.high %v2528_v7, %v2535_v8  ;;  %v4161_v13 = vcombine.low %v2544_v9, %v2551_v10  ;;  %v4163_v14 = vcombine.high %v2544_v9, %v2551_v10 }
 0xc4f   : > { %v2600_v15 = vrot.slane %v4157_v11, %v5493_v50  ;;  %v2616_v16 = vrot.slane %v4159_v12, %v5493_v50  ;;  %v2632_v18 = vrot.slane %v4161_v13, %v5493_v50  ;;  %v2648_v19 = vrot.slane %v4163_v14, %v5493_v50 }
 0xc51   : > { %v2656_v24 = vcombine.low %v2600_v15, %v2616_v16  ;;  %v2657_v25 = vcombine.high %v2600_v15, %v2616_v16  ;;  %v2680_v26 = vcombine.low %v2632_v18, %v2648_v19  ;;  %v2681_v27 = vcombine.high %v2632_v18, %v2648_v19 }
 0xc53   : > { %v2671_v28 = vrot.slane %v2657_v25, %v5496_v54  ;;  %v2695_v30 = vrot.slane %v2681_v27, %v5496_v54  ;;  %v2664_v31 = vrot.slane %v2656_v24, %v5496_v54  ;;  %v2688_v32 = vrot.slane %v2680_v26, %v5496_v54 }
 0xc55   : > { %v2706_v33 = vcombine.low %v2671_v28, %v2695_v30  ;;  %v2704_v35 = vcombine.low %v2664_v31, %v2688_v32  ;;  %v2707_v17 = vcombine.high %v2671_v28, %v2695_v30  ;;  %v2705_v36 = vcombine.high %v2664_v31, %v2688_v32 }
 0xc57   : > { %4453 = vmatpush3.xpose.msk.msra.mxu1 %vm1228_vm1, %v2706_v33 }
 0xc58   : > { %4457 = vmatprep.subr.mxu1 %v5111_v34 }
 0xc5a   : > { %4455 = vmatmul.mubr.msk.f32.vlgmr.msra.gmra.mrb[12].mxu1 %vm1228_vm1, %v2704_v35  ;;  %v4745_v35 = vld [vmem:[#allocation4 + $0x40] sm:$0xff]  }
 0xc5b   : > { %4458 = vmatpush3.xpose.msk.msra.mxu1 %vm1228_vm1, %v2707_v17  ;;  %4459 = vmatprep.mubr.msk.f32.mxu1 %vm5112_vm0, %v5111_v34  ;;  %v4746_v17 = vld [vmem:[#allocation4 + $0x48] sm:$0xff]  }
 0xc5c   : > { %4462 = vmatprep.subr.mxu1 %v5111_v34 }
 0xc5e   : > { %4460 = vmatmul.mubr.msk.f32.vlgmr.msra.gmra.mrb[14].mxu1 %vm1228_vm1, %v2705_v36  ;;  %v4747_v36 = vld [vmem:[#allocation4 + $0x50] sm:$0xff]  }
 0xc5f   : > { %4464 = vmatprep.mubr.msk.f32.mxu1 %vm5112_vm0, %v5111_v34 }
 0xd2d   : > { %v2782_v37 = vpop.f32.mrb[12].mxu1 }
 0xd2e   : > { %v2783_v38 = vadd.f32 %v5528_v29, %v2782_v37  ;;  %v4456_v39 = vpop.f32.mrb[13].mxu1  ;;  %v4748_v37 = vld [vmem:[#allocation4 + $0x58] sm:$0xff]  }
 0xd2f   : > { %v4750_v39 = vld [vmem:[#allocation4 + $0x68] sm:$0xff]  }
 0xd30   : > { %v2862_v41 = vsel %vm1381_vm2, %v2783_v38, -inf }
 0xd31   : > { %2863 = vmax.xlane.f32.xlu0 %v2862_v41  ;;  %v2858_v43 = vpop.f32.mrb[14].mxu1  ;;  %v4751_v41 = vld [vmem:[#allocation4 + $0x70] sm:$0xff]  }
 0xd32   : > { %v2859_v44 = vadd.f32 %v5528_v29, %v2858_v43  ;;  %v4461_v45 = vpop.f32.mrb[15].mxu1  ;;  %v2233_v29 = vrot.slane %v5683_v42, %v744_v55 }
 0xd34   : > { %v2865_v47 = vsel %vm1381_vm2, %v2859_v44, -inf  ;;  %v2441_v60 = vadd.f32 %v5689_v46, %v2233_v29 }
 0xd35   : > { %2866 = vmax.xlane.f32.xlu1 %v2865_v47 }
 0xd36   : > { %v2490_v1 = vcombine.high %v2441_v60, %v5111_v34  ;;  %v2497_v3 = vrot.slane %v2441_v60, %v5493_v50 }
 0xd38   : > { %v2504_v5 = vrot.slane %v2490_v1, %v5493_v50 }
 0xdbe   : > { %v2864_v48 = vpop.xlane.xlu0 %2863 }
 0xdbf   : > { %v2868_v49 = vsub.f32 %v2783_v38, %v2864_v48  ;;  %v4749_v38 = vld [vmem:[#allocation4 + $0x60] sm:$0xff]  }
 0xdc1   : > { %v2870_v51 = vmul.f32 1.442695, %v2868_v49 }
 0xdc2   : > { %v2867_v52 = vpop.xlane.xlu1 %2866 }
 0xdc3   : > { %4825 = vpow2.f32 %v2870_v51  ;;  %v2869_v0 = vsub.f32 %v2859_v44, %v2867_v52 }
 0xdc5   : > { %v2872_v53 = vmul.f32 1.442695, %v2869_v0 }
 0xdc7   : > { %4827 = vpow2.f32 %v2872_v53 }
 0xdcd   : > { %v4826_v56 = vpop.eup %4825 }
 0xdce   : > { %v2874_v57 = vsel %vm1381_vm2, %v4826_v56, 0.0 }
 0xdcf   : > { %2875 = vadd.xlane.f32.xlu0 %v2874_v57 }
 0xdd1   : > { %v4828_v58 = vpop.eup %4827 }
 0xdd2   : > { %v2877_v59 = vsel %vm1381_vm2, %v4828_v58, 0.0 }
 0xdd3   : > { %2878 = vadd.xlane.f32.xlu0 %v2877_v59 }
 0xde9   : > { %2455 = vrot.lane.b32.xlu0 %v2441_v60, %s5110_s1 }
 0xe5c   : > { %v2876_v61 = vpop.xlane.xlu0 %2875 }
 0xe5d   : > { %4829 = vrcp.f32 %v2876_v61 }
 0xe60   : > { %v2879_v63 = vpop.xlane.xlu0 %2878 }
 0xe61   : > { %4831 = vrcp.f32 %v2879_v63 }
 0xe64   : > { %v2456_v2 = vpop.permute.xlu0 %2455 }
 0xe65   : > { %v2505_v4 = vcombine.high %v2456_v2, %v5111_v34  ;;  %v2512_v22 = vrot.slane %v2456_v2, %v5493_v50 }
 0xe67   : > { %v2519_v20 = vrot.slane %v2505_v4, %v5493_v50  ;;  %v2552_v55 = vcombine.low %v2497_v3, %v2512_v22  ;;  %v2553_v42 = vcombine.high %v2497_v3, %v2512_v22  ;;  %v4830_v25 = vpop.eup %4829 }
 0xe68   : > { %v2882_v31 = vmul.f32 %v4830_v25, %v4826_v56  ;;  %v4758_v25 = vld [vmem:[%s5909_s8 + $0x94] ss:$8 sps:$4 sm:$0xff]  }
 0xe69   : > { %v2560_v46 = vrot.slane %v2552_v55, %v5496_v54  ;;  %v2567_v6 = vrot.slane %v2553_v42, %v5496_v54  ;;  %v2568_v62 = vcombine.low %v2504_v5, %v2519_v20  ;;  %v2569_v7 = vcombine.high %v2504_v5, %v2519_v20 }
 0xe6b   : > { %v2576_v8 = vrot.slane %v2568_v62, %v5496_v54  ;;  %v2583_v9 = vrot.slane %v2569_v7, %v5496_v54  ;;  %v4158_v10 = vcombine.low %v2560_v46, %v2567_v6  ;;  %v4160_v11 = vcombine.high %v2560_v46, %v2567_v6  ;;  %v4832_v30 = vpop.eup %4831 }
 0xe6c   : > { %v2883_v33 = vmul.f32 %v4832_v30, %v4828_v58  ;;  %v4752_v58 = vld [vmem:[#allocation4 + $0x78] sm:$0xff]  }
 0xe6d   : > { %v2607_v12 = vrot.slane %v4158_v10, %v5493_v50  ;;  %v2623_v13 = vrot.slane %v4160_v11, %v5493_v50  ;;  %v4162_v14 = vcombine.low %v2576_v8, %v2583_v9  ;;  %v4164_v15 = vcombine.high %v2576_v8, %v2583_v9 }
 0xe6f   : > { %v2639_v16 = vrot.slane %v4162_v14, %v5493_v50  ;;  %v2655_v18 = vrot.slane %v4164_v15, %v5493_v50  ;;  %v2672_v19 = vcombine.low %v2607_v12, %v2623_v13  ;;  %v4174_v13 = vld [vmem:[%s5906_s5 + $0x1] ss:$0 sm:$0xff] }
 0xe71   : > { %v2696_v24 = vcombine.low %v2639_v16, %v2655_v18  ;;  %v2679_v26 = vrot.slane %v2672_v19, %v5496_v54  ;;  %v4753_v19 = vld [vmem:[%s5909_s8 + $0x80] ss:$8 sps:$4 sm:$0xff]  }
 0xe73   : > { %v2703_v27 = vrot.slane %v2696_v24, %v5496_v54  ;;  %v4755_v24 = vld [vmem:[%s5909_s8 + $0x84] ss:$8 sps:$4 sm:$0xff]  }
 0xe74   : > { %3406 = vmatprep.subr.bf16.mxu0 %v4755_v24 }
 0xe75   : > { %v2708_v28 = vcombine.low %v2679_v26, %v2703_v27  ;;  %v2709_v32 = vcombine.high %v2679_v26, %v2703_v27  ;;  %3407 = vmatpush1.bf16.msra.mxu0 %v4753_v19  ;;  %v4756_v26 = vld [vmem:[%s5909_s8 + $0x90] ss:$8 sps:$4 sm:$0xff]   ;;  %v4759_v27 = vld [vmem:[%s5909_s8 + $0xa0] ss:$8 sps:$4 sm:$0xff]  }
 0xe76   : > { %3408 = vmatprep.subr.bf16.mxu0 %v4758_v25 }
 0xe77   : > { %4463 = vmatpush3.msra.mxu1 %v2708_v28 }
 0xe78   : > { %4465 = vmatmul.mubr.msk.f32.vlgmr.msra.gmra.mrb[16].mxu1 %vm1381_vm2, %v2882_v31  ;;  %4467 = vmatprep.subr.mxu1 %v5111_v34 }
 0xe79   : > { %4468 = vmatpush3.msra.mxu1 %v2709_v32  ;;  %4469 = vmatprep.mubr.msk.f32.mxu1 %vm5112_vm0, %v5111_v34 }
 0xe7a   : > { %4472 = vmatprep.subr.bf16.mxu1 %v5111_v34  ;;  %3409 = vmatpush1.bf16.msra.mxu0 %v4756_v26 }
 0xe7c   : > { %4470 = vmatmul.mubr.msk.f32.vlgmr.msra.gmra.mrb[18].mxu1 %vm1381_vm2, %v2883_v33  ;;  %v4764_v33 = vld [vmem:[%s5909_s8 + $0xb4] ss:$8 sps:$4 sm:$0xff]  }
 0xe7d   : > { %4488 = vmatprep.mubr.msk.bf16.mxu1 %vm5112_vm0, %v5111_v34  ;;  %4473 = vmatpush3.bf16.msra.mxu1 %v4745_v35  ;;  %v4762_v35 = vld [vmem:[%s5909_s8 + $0xb0] ss:$8 sps:$4 sm:$0xff]  }
 0xe7e   : > { %4474 = vmatprep.subr.bf16.mxu1 %v5111_v34 }
 0xe81   : > { %4475 = vmatpush3.bf16.msra.mxu1 %v4746_v17  ;;  %v4767_v17 = vld [vmem:[%s5909_s8 + $0xc4] ss:$8 sps:$4 sm:$0xff]  }
 0xe82   : > { %4476 = vmatprep.subr.bf16.mxu1 %v5111_v34 }
 0xe85   : > { %4477 = vmatpush3.bf16.msra.mxu1 %v4747_v36  ;;  %v4765_v36 = vld [vmem:[%s5909_s8 + $0xc0] ss:$8 sps:$4 sm:$0xff]  }
 0xe86   : > { %4478 = vmatprep.subr.bf16.mxu1 %v5111_v34 }
 0xe89   : > { %4479 = vmatpush3.bf16.msra.mxu1 %v4748_v37  ;;  %v4770_v37 = vld [vmem:[%s5909_s8 + $0xd4] ss:$8 sps:$4 sm:$0xff]  }
 0xe8a   : > { %4480 = vmatprep.subr.bf16.mxu1 %v5111_v34 }
 0xe8d   : > { %4481 = vmatpush3.bf16.msra.mxu1 %v4749_v38  ;;  %v4768_v38 = vld [vmem:[%s5909_s8 + $0xd0] ss:$8 sps:$4 sm:$0xff]  }
 0xe8e   : > { %4482 = vmatprep.subr.bf16.mxu1 %v5111_v34 }
 0xe91   : > { %4483 = vmatpush3.bf16.msra.mxu1 %v4750_v39  ;;  %v4773_v39 = vld [vmem:[%s5909_s8 + $0xe4] ss:$8 sps:$4 sm:$0xff]  }
 0xe92   : > { %4484 = vmatprep.subr.bf16.mxu1 %v5111_v34 }
 0xe95   : > { %4485 = vmatpush3.bf16.msra.mxu1 %v4751_v41  ;;  %v4771_v41 = vld [vmem:[%s5909_s8 + $0xe0] ss:$8 sps:$4 sm:$0xff]  }
 0xe96   : > { %4486 = vmatprep.subr.bf16.mxu1 %v5111_v34 }
 0xe99   : > { %4487 = vmatpush3.bf16.msra.mxu1 %v4752_v58  ;;  %v4777_v58 = vld [vmem:[#allocation7 + $0xc0] sm:$0xff]  }
 0xe9a   : > { %4332 = vmatprep.subr.bf16.mxu1 %v4777_v58  ;;  %v4799_v58 = vld [vmem:[%s5958_s2 + $0x30] sm:$0xff]  }
 0xf4b   : > { %v2953_v43 = vpop.f32.mrb[16].mxu1 }
 0xf4c   : > { %v4466_v44 = vpop.f32.mrb[17].mxu1  ;;  %v3030_v45 = vcombine.high %v2953_v43, %v5111_v34  ;;  %v3037_v48 = vrot.slane %v2953_v43, %v5493_v50  ;;  %v4776_v43 = vld [vmem:[%s5909_s8 + $0xf4] ss:$8 sps:$4 sm:$0xff]  }
 0xf4d   : > { %v4774_v44 = vld [vmem:[%s5909_s8 + $0xf0] ss:$8 sps:$4 sm:$0xff]  }
 0xf4e   : > { %v3044_v0 = vrot.slane %v3030_v45, %v5493_v50 }
 0xf4f   : > { %v3026_v47 = vpop.f32.mrb[18].mxu1 }
 0xf50   : > { %v3045_v49 = vcombine.high %v3026_v47, %v5111_v34  ;;  %v3052_v51 = vrot.slane %v3026_v47, %v5493_v50  ;;  %v4471_v52 = vpop.f32.mrb[19].mxu1 }
 0xf52   : > { %v3059_v53 = vrot.slane %v3045_v49, %v5493_v50  ;;  %v3060_v56 = vcombine.low %v3037_v48, %v3052_v51  ;;  %v3061_v57 = vcombine.high %v3037_v48, %v3052_v51  ;;  %v4184_v51 = vld [vmem:[#allocation6 + $0x1] ss:$0 sm:$0xff] }
 0xf54   : > { %v3068_v59 = vrot.slane %v3060_v56, %v5496_v54  ;;  %v3075_v29 = vrot.slane %v3061_v57, %v5496_v54  ;;  %v3076_v60 = vcombine.low %v3044_v0, %v3059_v53  ;;  %v3077_v61 = vcombine.high %v3044_v0, %v3059_v53  ;;  %v4185_v0 = vld [vmem:[%s5908_s7 + $0x1] ss:$0 sm:$0xff] }
 0xf56   : > { %v3084_v63 = vrot.slane %v3076_v60, %v5496_v54  ;;  %v3091_v1 = vrot.slane %v3077_v61, %v5496_v54  ;;  %v3096_v2 = vcombine.low %v3068_v59, %v3075_v29  ;;  %v4171_v3 = vcombine.high %v3068_v59, %v3075_v29  ;;  %v4778_v59 = vld [vmem:[#allocation7 + $0x80] sm:$0xff]   ;;  %v4779_v29 = vld [vmem:[#allocation7 + $0xc8] sm:$0xff]   ;;  %v4781_v61 = vld [vmem:[#allocation7 + $0xd0] sm:$0xff]  }
 0xf57   : > { %v4780_v60 = vld [vmem:[#allocation7 + $0x88] sm:$0xff]  }
 0xf58   : > { %v3103_v4 = vrot.slane %v3096_v2, %v5493_v50  ;;  %v3111_v22 = vrot.slane %v4171_v3, %v5493_v50  ;;  %v3112_v5 = vcombine.low %v3084_v63, %v3091_v1  ;;  %v4172_v20 = vcombine.high %v3084_v63, %v3091_v1  ;;  %v4782_v63 = vld [vmem:[#allocation7 + $0x90] sm:$0xff]   ;;  %v4783_v1 = vld [vmem:[#allocation7 + $0xd8] sm:$0xff]   ;;  %v4785_v3 = vld [vmem:[#allocation7 + $0xe0] sm:$0xff]  }
 0xf59   : > { %v4784_v2 = vld [vmem:[#allocation7 + $0x98] sm:$0xff]  }
 0xf5a   : > { %v3119_v55 = vrot.slane %v3112_v5, %v5493_v50  ;;  %v3127_v42 = vrot.slane %v4172_v20, %v5493_v50  ;;  %v3128_v46 = vcombine.low %v3103_v4, %v3111_v22  ;;  %v4786_v4 = vld [vmem:[#allocation7 + $0xa0] sm:$0xff]   ;;  %v4787_v22 = vld [vmem:[#allocation7 + $0xe8] sm:$0xff]   ;;  %v4789_v20 = vld [vmem:[#allocation7 + $0xf0] sm:$0xff]  }
 0xf5b   : > { %v4788_v5 = vld [vmem:[#allocation7 + $0xa8] sm:$0xff]  }
 0xf5c   : > { %v3136_v6 = vcombine.low %v3119_v55, %v3127_v42  ;;  %v3135_v62 = vrot.slane %v3128_v46, %v5496_v54  ;;  %v4790_v55 = vld [vmem:[#allocation7 + $0xb0] sm:$0xff]   ;;  %v4791_v42 = vld [vmem:[#allocation7 + $0xf8] sm:$0xff]  }
 0xf5d   : > { %v4792_v46 = vld [vmem:[#allocation7 + $0xb8] sm:$0xff]  }
 0xf5e   : > { %v3143_v7 = vrot.slane %v3136_v6, %v5496_v54  ;;  %v4202_v6 = vld [vmem:[%s5910_s9 + $0x2] sm:$0x3] }
 0xf60   : > { %v3145_v8 = vcombine.high %v3135_v62, %v3143_v7  ;;  %v3144_v9 = vcombine.low %v3135_v62, %v3143_v7  ;;  %v3319_v62 = vrot.slane %v4202_v6, %v5462_v21  ;;  %v3323_v7 = vrot.slane %v4202_v6, %v5470_v23  ;;  %v4805_v6 = vld [vmem:[#allocation12 + $0x20] sm:$0xff]  }
 0xf62   : > { %3147 = vrot.lane.b32.xlu1 %v3145_v8, %s5110_s1 }
 0xfd4   : > { %v3148_v10 = vpop.permute.xlu1 %3147 }
 0xfd5   : > { %v3150_v11 = vsel %vm1228_vm1, %v3144_v9, %v3148_v10 }
 0xfd6   : > { %v3151_v12 = vpack.c.bf16 %v3150_v11, %v3150_v11 }
 0xfd8   : > { %4489 = vmatmul.mubr.bf16.vlgmr.msra.gmra.mrb[20].mxu1 %v3151_v12 }
 0xfd9   : > { %4333 = vmatpush3.bf16.msra.mxu1 %v4778_v59  ;;  %v4800_v59 = vld [vmem:[%s5958_s2 + $0x38] sm:$0xff]  }
 0xfda   : > { %4334 = vmatprep.subr.bf16.mxu1 %v4779_v29  ;;  %v4801_v29 = vld [vmem:[#allocation12] sm:$0xff]  }
 0xfdd   : > { %4335 = vmatpush3.bf16.msra.mxu1 %v4780_v60  ;;  %v4802_v60 = vld [vmem:[#allocation12 + $0x8] sm:$0xff]  }
 0xfde   : > { %4336 = vmatprep.subr.bf16.mxu1 %v4781_v61  ;;  %v4803_v61 = vld [vmem:[#allocation12 + $0x10] sm:$0xff]  }
 0xfe1   : > { %4337 = vmatpush3.bf16.msra.mxu1 %v4782_v63  ;;  %v4804_v63 = vld [vmem:[#allocation12 + $0x18] sm:$0xff]  }
 0xfe2   : > { %4338 = vmatprep.subr.bf16.mxu1 %v4783_v1 }
 0xfe5   : > { %4339 = vmatpush3.bf16.msra.mxu1 %v4784_v2 }
 0xfe6   : > { %4340 = vmatprep.subr.bf16.mxu1 %v4785_v3 }
 0xfe9   : > { %4341 = vmatpush3.bf16.msra.mxu1 %v4786_v4 }
 0xfea   : > { %4342 = vmatprep.subr.bf16.mxu1 %v4787_v22  ;;  %v4238_v22 = vld [vmem:[#allocation9 + $0x1] ss:$0 sm:$0xff] }
 0xfed   : > { %4343 = vmatpush3.bf16.msra.mxu1 %v4788_v5 }
 0xfee   : > { %4344 = vmatprep.subr.bf16.mxu1 %v4789_v20  ;;  %v4239_v20 = vld [vmem:[%s5957_s24 + $0x1] ss:$0 sm:$0xff] }
 0xff1   : > { %4345 = vmatpush3.bf16.msra.mxu1 %v4790_v55 }
 0xff2   : > { %4346 = vmatprep.subr.bf16.mxu1 %v4791_v42 }
 0xff5   : > { %4347 = vmatpush3.bf16.msra.mxu1 %v4792_v46 }
 0xff6   : > { %4512 = vmatprep.subr.bf16.mxu1 %v5111_v34 }
0x10ab   : > { %v3259_v50 = vpop.f32.mrb[20].mxu1 }
0x10ac   : > { %v3260_v14 = vadd.f32 %v4174_v13, %v3259_v50  ;;  %v4490_v15 = vpop.f32.mrb[21].mxu1 }
0x10ad   : > { %v3262_v16 = vpop.f32.mrb[22].mxu1 }
0x10ae   : > { %v4491_v18 = vpop.f32.mrb[23].mxu1  ;;  %v3265_v54 = vadd.f32 %v3260_v14, %v5673_v40  ;;  %v4761_v40 = vld [vmem:[%s5909_s8 + $0xa4] ss:$8 sps:$4 sm:$0xff]  }
0x10af   : > { %3410 = vmatprep.subr.bf16.mxu0 %v4761_v40 }
0x10b0   : > { %3270 = vadd.xlane.f32.xlu0 %v3265_v54  ;;  %3411 = vmatpush1.bf16.msra.mxu0 %v4759_v27 }
0x10b1   : > { %3412 = vmatprep.subr.bf16.mxu0 %v4764_v33 }
0x10b4   : > { %3413 = vmatpush1.bf16.msra.mxu0 %v4762_v35 }
0x10b5   : > { %3414 = vmatprep.subr.bf16.mxu0 %v4767_v17 }
0x10b8   : > { %3415 = vmatpush1.bf16.msra.mxu0 %v4765_v36  ;;  %v4220_v36 = vld [vmem:[%s5956_s13 + $0x1] ss:$0 sm:$0xff] }
0x10b9   : > { %3416 = vmatprep.subr.bf16.mxu0 %v4770_v37 }
0x10bc   : > { %3417 = vmatpush1.bf16.msra.mxu0 %v4768_v38 }
0x10bd   : > { %3418 = vmatprep.subr.bf16.mxu0 %v4773_v39 }
0x10c0   : > { %3419 = vmatpush1.bf16.msra.mxu0 %v4771_v41 }
0x10c1   : > { %3420 = vmatprep.subr.bf16.mxu0 %v4776_v43 }
0x10c4   : > { %3421 = vmatpush1.bf16.msra.mxu0 %v4774_v44 }
0x10c5   : > { %4492 = vmatprep.subr.bf16.mxu0 %v5111_v34 }
0x113d   : > { %v3271_v28 = vpop.xlane.xlu0 %3270 }
0x113e   : > { %v3272_v30 = vmul.f32 0.0078125, %v3271_v28 }
0x1140   : > { %v3273_v31 = vsub.f32 %v3265_v54, %v3272_v30 }
0x1142   : > { %v3274_v32 = vmul.f32 %v3273_v31, %v3273_v31 }
0x1144   : > { %3275 = vadd.xlane.f32.xlu1 %v3274_v32 }
0x11d1   : > { %v3276_v45 = vpop.xlane.xlu1 %3275 }
0x11d2   : > { %v3277_v47 = vmul.f32 0.0078125, %v3276_v45  ;;  %v4793_v45 = vld [vmem:[%s5958_s2] sm:$0xff]  }
0x11d4   : > { %v3278_v48 = vadd.f32 1e-12, %v3277_v47  ;;  %v4794_v47 = vld [vmem:[%s5958_s2 + $0x8] sm:$0xff]  }
0x11d6   : > { %4833 = vrsqrt.f32 %v3278_v48 }
0x11e0   : > { %v4834_v49 = vpop.eup %4833 }
0x11e1   : > { %v3280_v52 = vmul.f32 %v4834_v49, %v3273_v31 }
0x11e3   : > { %v3287_v53 = vmul.f32 %v4184_v51, %v3280_v52 }
0x11e5   : > { %v5835_v56 = vadd.f32 %v4185_v0, %v3287_v53  ;;  %v4795_v0 = vld [vmem:[%s5958_s2 + $0x10] sm:$0xff]   ;;  %v4796_v53 = vld [vmem:[%s5958_s2 + $0x18] sm:$0xff]  }
0x11e7   : > { %v3295_v57 = vpack.c.bf16 %v5835_v56, %v5835_v56 }
0x11e9   : > { %3439 = vmatmul.mubr.bf16.vlgmr.msra.gmra.mrb[24].mxu0 %v3295_v57  ;;  %v4798_v57 = vld [vmem:[%s5958_s2 + $0x28] sm:$0xff]  }
0x11ea   : > { %4508 = vmatprep.mubr.msk.bf16.mxu0 %vm5112_vm0, %v5111_v34  ;;  %4493 = vmatpush3.bf16.msra.mxu0 %v4793_v45 }
0x11eb   : > { %4494 = vmatprep.subr.bf16.mxu0 %v5111_v34 }
0x11ee   : > { %4495 = vmatpush3.bf16.msra.mxu0 %v4794_v47 }
0x11ef   : > { %4496 = vmatprep.subr.bf16.mxu0 %v5111_v34 }
0x11f2   : > { %4497 = vmatpush3.bf16.msra.mxu0 %v4795_v0 }
0x11f3   : > { %4498 = vmatprep.subr.bf16.mxu0 %v5111_v34 }
0x11f6   : > { %4499 = vmatpush3.bf16.msra.mxu0 %v4796_v53 }
0x11f7   : > { %4500 = vmatprep.subr.bf16.mxu0 %v5111_v34 }
0x12bc   : > { %v3440_v8 = vpop.f32.mrb[24].mxu0 }
0x12bd   : > { %v3441_v9 = vadd.f32 %v3440_v8, %v3319_v62  ;;  %v3442_v10 = vpop.f32.mrb[25].mxu0  ;;  %v4806_v62 = vld [vmem:[#allocation12 + $0x28] sm:$0xff]   ;;  %v4808_v8 = vld [vmem:[#allocation12 + $0x38] sm:$0xff]  }
0x12be   : > { %v3443_v11 = vadd.f32 %v3442_v10, %v3323_v7  ;;  %v3444_v12 = vpop.f32.mrb[26].mxu0  ;;  %v4807_v7 = vld [vmem:[#allocation12 + $0x30] sm:$0xff]  }
0x12bf   : > { %v3449_v13 = vmul.f32 0.044715, %v3441_v9  ;;  %v3445_v50 = vpop.f32.mrb[27].mxu0  ;;  %v3447_v40 = vmul.f32 0.5, %v3441_v9 }
0x12c0   : > { %v3450_v14 = vmul.f32 0.044715, %v3443_v11  ;;  %v3448_v28 = vmul.f32 0.5, %v3443_v11 }
0x12c1   : > { %v3451_v15 = vmul.f32 %v3449_v13, %v3441_v9 }
0x12c2   : > { %v3452_v16 = vmul.f32 %v3450_v14, %v3443_v11 }
0x12c3   : > { %v3453_v18 = vmul.f32 %v3451_v15, %v3441_v9 }
0x12c4   : > { %v3454_v54 = vmul.f32 %v3452_v16, %v3443_v11  ;;  %v3798_v16 = vld [vmem:[#allocation13] sm:$0x1] }
0x12c5   : > { %v3455_v19 = vadd.f32 %v3453_v18, %v3441_v9  ;;  %v3691_v9 = vld [vmem:[#allocation10] sm:$0x1] }
0x12c6   : > { %v3456_v24 = vadd.f32 %v3454_v54, %v3443_v11 }
0x12c7   : > { %v3457_v25 = vmul.f32 0.7978846, %v3455_v19 }
0x12c8   : > { %v3458_v26 = vmul.f32 0.7978846, %v3456_v24 }
0x12c9   : > { %4835 = vtanh.f32 %v3457_v25 }
0x12ca   : > { %4837 = vtanh.f32 %v3458_v26 }
0x12d3   : > { %v4836_v21 = vpop.eup %4835 }
0x12d4   : > { %v4838_v23 = vpop.eup %4837  ;;  %v3461_v27 = vadd.f32 1.0, %v4836_v21 }
0x12d5   : > { %v3462_v30 = vadd.f32 1.0, %v4838_v23 }
0x12d6   : > { %v3463_v31 = vmul.f32 %v3461_v27, %v3447_v40 }
0x12d7   : > { %v3464_v32 = vmul.f32 %v3462_v30, %v3448_v28 }
0x12d8   : > { %v3465_v35 = vpack.c.bf16 %v3463_v31, %v3463_v31 }
0x12d9   : > { %v3466_v33 = vpack.c.bf16 %v3464_v32, %v3464_v32 }
0x12db   : > { %3636 = vmatprep.mubr.bf16.mxu1 %v3466_v33 }
0x12dc   : > { %3637 = vmatmul.mubr.bf16.vlgmr.msra.gmra.mrb[24].mxu1 %v3465_v35 }
0x12dd   : > { %4528 = vmatprep.mubr.msk.bf16.mxu1 %vm5112_vm0, %v5111_v34  ;;  %4513 = vmatpush3.bf16.msra.mxu1 %v4801_v29 }
0x12de   : > { %4514 = vmatprep.subr.bf16.mxu1 %v5111_v34 }
0x12e1   : > { %4515 = vmatpush3.bf16.msra.mxu1 %v4802_v60 }
0x12e2   : > { %4516 = vmatprep.subr.bf16.mxu1 %v5111_v34 }
0x12e5   : > { %4517 = vmatpush3.bf16.msra.mxu1 %v4803_v61 }
0x12e6   : > { %4518 = vmatprep.subr.bf16.mxu1 %v5111_v34 }
0x12e9   : > { %4519 = vmatpush3.bf16.msra.mxu1 %v4804_v63 }
0x12ea   : > { %4520 = vmatprep.subr.bf16.mxu1 %v5111_v34 }
0x12ed   : > { %4521 = vmatpush3.bf16.msra.mxu1 %v4805_v6 }
0x12ee   : > { %4522 = vmatprep.subr.bf16.mxu1 %v5111_v34 }
0x12f1   : > { %4523 = vmatpush3.bf16.msra.mxu1 %v4806_v62 }
0x12f2   : > { %4524 = vmatprep.subr.bf16.mxu1 %v5111_v34 }
0x12f5   : > { %4525 = vmatpush3.bf16.msra.mxu1 %v4807_v7 }
0x12f6   : > { %4526 = vmatprep.subr.bf16.mxu1 %v5111_v34 }
0x12f9   : > { %4527 = vmatpush3.bf16.msra.mxu1 %v4808_v8 }
0x13af   : > { %v4348_v17 = vpop.f32.mrb[24].mxu1 }
0x13b0   : > { %v4349_v37 = vpop.f32.mrb[25].mxu1 }
0x13b1   : > { %v4350_v38 = vadd.f32 %v4349_v37, %v4348_v17  ;;  %v4351_v39 = vpop.f32.mrb[26].mxu1 }
0x13b2   : > { %v4352_v41 = vpop.f32.mrb[27].mxu1 }
0x13b3   : > { %v3639_v43 = vadd.f32 %v4350_v38, %v4220_v36 }
0x13b5   : > { %v3644_v44 = vadd.f32 %v3639_v43, %v5835_v56  ;;  %v4797_v56 = vld [vmem:[%s5958_s2 + $0x20] sm:$0xff]  }
0x13b6   : > { %4501 = vmatpush3.bf16.msra.mxu0 %v4797_v56 }
0x13b7   : > { %3649 = vadd.xlane.f32.xlu0 %v3644_v44  ;;  %4502 = vmatprep.subr.bf16.mxu0 %v5111_v34 }
0x13ba   : > { %4503 = vmatpush3.bf16.msra.mxu0 %v4798_v57 }
0x13bb   : > { %4504 = vmatprep.subr.bf16.mxu0 %v5111_v34 }
0x13be   : > { %4505 = vmatpush3.bf16.msra.mxu0 %v4799_v58 }
0x13bf   : > { %4506 = vmatprep.subr.bf16.mxu0 %v5111_v34 }
0x13c2   : > { %4507 = vmatpush3.bf16.msra.mxu0 %v4800_v59 }
0x1444   : > { %v3650_v48 = vpop.xlane.xlu0 %3649 }
0x1445   : > { %v3651_v49 = vmul.f32 0.0078125, %v3650_v48 }
0x1447   : > { %v3652_v51 = vsub.f32 %v3644_v44, %v3651_v49 }
0x1449   : > { %v3653_v52 = vmul.f32 %v3652_v51, %v3652_v51 }
0x144b   : > { %3654 = vadd.xlane.f32.xlu0 %v3653_v52 }
0x14d8   : > { %v3655_v1 = vpop.xlane.xlu0 %3654 }
0x14d9   : > { %v3656_v2 = vmul.f32 0.0078125, %v3655_v1 }
0x14db   : > { %v3657_v3 = vadd.f32 1e-12, %v3656_v2 }
0x14dd   : > { %4839 = vrsqrt.f32 %v3657_v3 }
0x14e7   : > { %v4840_v4 = vpop.eup %4839 }
0x14e8   : > { %v3659_v5 = vmul.f32 %v4840_v4, %v3652_v51 }
0x14ea   : > { %v3666_v55 = vmul.f32 %v4238_v22, %v3659_v5 }
0x14ec   : > { %v3673_v42 = vadd.f32 %v4239_v20, %v3666_v55 }
0x14ee   : > { %v3674_v46 = vpack.c.bf16 %v3673_v42, %v3673_v42 }
0x14f0   : > { %4509 = vmatmul.mubr.bf16.vlgmr.msra.gmra.mrb[28].mxu0 %v3674_v46 }
0x15c3   : > { %v3774_v10 = vpop.f32.mrb[28].mxu0 }
0x15c4   : > { %v3775_v11 = vadd.f32 %v3774_v10, %v3691_v9  ;;  %v4510_v12 = vpop.f32.mrb[29].mxu0 }
0x15c5   : > { %v3777_v13 = vpop.f32.mrb[30].mxu0 }
0x15c6   : > { %4841 = vtanh.f32 %v3775_v11  ;;  %v4511_v50 = vpop.f32.mrb[31].mxu0 }
0x15d0   : > { %v4842_v14 = vpop.eup %4841 }
0x15d1   : > { %v3781_v15 = vpack.c.bf16 %v4842_v14, %v4842_v14 }
0x15d3   : > { %4529 = vmatmul.mubr.bf16.vlgmr.msra.gmra.mrb[28].mxu1 %v3781_v15 }
0x16a6   : > { %v3881_v18 = vpop.f32.mrb[28].mxu1 }
0x16a7   : > { %v3882_v54 = vadd.f32 %v3881_v18, %v3798_v16  ;;  %v4530_v34 = vpop.f32.mrb[29].mxu1 }
0x16a8   : > { %v3884_v19 = vpop.f32.mrb[30].mxu1 }
0x16a9   : > { %3887 = vst [vmem:[%s695_s21] sm:$0x1] %v3882_v54  ;;  %v4531_v24 = vpop.f32.mrb[31].mxu1 }
0x16aa PF: > { %s5960_s1 = sld [smem:[#allocation20_spill]] }
0x16b0   : > { %s33_s27 = sadd.s32 1, %s5960_s1  }
0x16b1   : > { %p30_p11 = scmp.ge.s32.totalorder %s33_s27, 4  }
0x16b3   :  { %32 = sbr.rel (!%p30_p11) target bundleno = 13 (0xd), region = 170 }
0x16ba   :  { %3905 = vsyncpa [#allocation3], 1 }
0x16bb   :  { %3907 = vsyncpa [#allocation3 + $0x1], 1 }
0x16bc   :  { %3908 = vsyncpa [#allocation5], 1 }
0x16bd   :  { %3909 = vsyncpa [#allocation8], 1 }
0x16be   :  { %3910 = vsyncpa [#allocation11], 1 }
0x16bf   :  { %3911 = vsyncpa [#allocation14], 1 }

</bundles_post_ra>
